<compile_context>
chip_gen: v5e
topology: v5e:2x2
jax: 0.10.0
libtpu: 0.0.40
codegen_flags: <defaults>
</compile_context>

<pallas_src>
import jax
import jax.numpy as jnp
from jax.experimental import pallas as pl
from jax.experimental.pallas import tpu as pltpu

EPS = 1e-5  # BatchNorm2d default eps


def _fused_cnn_kernel(x_ref, wd_ref, g_ref, gt_ref, gamma_ref, beta_ref,
                      wf_ref, bf_ref, o_ref):
    # x_ref : (R, 2048)  rows = (b, hi, wi), lanes = (hg, wg, feature[32])
    # wd_ref: (512, 128) block-diag conv weight: 16 blocks of (32, 8)
    # g_ref : (128, 8)   lane-group -> channel sum matrix
    # gt_ref: (8, 128)   channel -> lane-group broadcast matrix
    # wf_ref: (512, 10)  FC weight permuted to (hg, wg, c) row order
    # o_ref : (B, 10)
    R = x_ref.shape[0]                 # B * 16 pool-pixel rows
    B = o_ref.shape[0]
    n_chunks = x_ref.shape[1] // 512   # 4 chunks of 128 output lanes (2 hg each)
    inv_m = 1.0 / float(R * 16 * n_chunks)   # 1 / (B*32*32) conv outputs/channel

    # ---- conv as lane-dense matmuls; accumulate one-pass BN statistics -------
    ys = []
    colsum = jnp.zeros((1, 128), jnp.float32)
    colsq = jnp.zeros((1, 128), jnp.float32)
    for k in range(n_chunks):
        y = jnp.dot(x_ref[:, k * 512:(k + 1) * 512], wd_ref[...],
                    preferred_element_type=jnp.float32)          # (R, 128)
        colsum = colsum + jnp.sum(y, axis=0, keepdims=True)
        colsq = colsq + jnp.sum(y * y, axis=0, keepdims=True)
        ys.append(y)

    # ---- fold BN (train-mode, biased var) into one per-channel scale/shift ---
    csum = jnp.dot(colsum, g_ref[...], preferred_element_type=jnp.float32)  # (1,8)
    csq = jnp.dot(colsq, g_ref[...], preferred_element_type=jnp.float32)    # (1,8)
    mean = csum * inv_m
    var = csq * inv_m - mean * mean
    scale = gamma_ref[...] * jax.lax.rsqrt(var + EPS)                       # (1,8)
    shift = beta_ref[...] - mean * scale                                    # (1,8)
    scale_w = jnp.dot(scale, gt_ref[...], preferred_element_type=jnp.float32)  # (1,128)
    shift_w = jnp.dot(shift, gt_ref[...], preferred_element_type=jnp.float32)  # (1,128)

    # ---- scale/shift + ReLU + 4x4 maxpool (in registers) + fused FC ----------
    acc = jnp.zeros((B, o_ref.shape[1]), jnp.float32)
    for k in range(n_chunks):
        z = jnp.maximum(ys[k] * scale_w + shift_w, 0.0)                     # (R,128)
        # pool window = the 16 consecutive rows of each batch element
        pooled = jnp.concatenate(
            [jnp.max(z[b * 16:(b + 1) * 16, :], axis=0, keepdims=True)
             for b in range(B)], axis=0)                                    # (B,128)
        acc = acc + jnp.dot(pooled, wf_ref[k * 128:(k + 1) * 128, :],
                            preferred_element_type=jnp.float32)
    o_ref[...] = acc + bf_ref[...]


@jax.jit
def simple_cnn_forward(x_nchw, w_conv, b_conv, gamma, beta, w_fc, b_fc):
    # b_conv is accepted for API parity but unused: train-mode BN's mean
    # subtraction cancels a per-channel conv bias exactly.
    del b_conv
    B = x_nchw.shape[0]
    H = W = 32
    R = B * 16

    # ---- glue (layout plumbing only): single im2col patches array ------------
    x_nhwc = jnp.transpose(x_nchw, (0, 2, 3, 1))                 # (B,32,32,3)
    xp = jnp.pad(x_nhwc, ((0, 0), (1, 1), (1, 1), (0, 0)))       # padding=1
    cols = [xp[:, kh:kh + H, kw:kw + W, :] for kh in range(3) for kw in range(3)]
    patches = jnp.stack(cols, axis=-1).reshape(B, H, W, 27)      # f = ic*9+kh*3+kw
    patches = jnp.pad(patches, ((0, 0), (0, 0), (0, 0), (0, 5))) # 27 -> 32 feats
    patches = patches.reshape(B, 8, 4, 8, 4, 32)                 # (b,hg,hi,wg,wi,f)
    patches = jnp.transpose(patches, (0, 2, 4, 1, 3, 5))         # (b,hi,wi,hg,wg,f)
    xk = patches.reshape(R, 2048)                                # rows=(b,hi,wi)

    # block-diagonal conv weight: 16 diagonal (32,8) blocks -> (512,128)
    wcp = jnp.pad(w_conv.reshape(8, 27).T, ((0, 5), (0, 0)))     # (32,8)
    wd = jnp.kron(jnp.eye(16, dtype=wcp.dtype), wcp)             # (512,128)
    # lane-group <-> channel 0/1 matrices for BN stats
    g = jnp.kron(jnp.ones((16, 1), wcp.dtype), jnp.eye(8, dtype=wcp.dtype))  # (128,8)
    gt = g.T                                                                 # (8,128)
    gamma2 = gamma.reshape(1, 8)
    beta2 = beta.reshape(1, 8)
    # FC weight permuted to (hg, wg, c) row order to match the kernel layout
    wf = jnp.transpose(w_fc.reshape(10, 8, 8, 8), (2, 3, 1, 0)).reshape(512, 10)
    bf = b_fc.reshape(1, 10)

    out = pl.pallas_call(
        _fused_cnn_kernel,
        out_shape=jax.ShapeDtypeStruct((B, 10), jnp.float32),
        grid=(1,),
        in_specs=[
            pl.BlockSpec((R, 2048), lambda i: (0, 0)),
            pl.BlockSpec((512, 128), lambda i: (0, 0)),
            pl.BlockSpec((128, 8), lambda i: (0, 0)),
            pl.BlockSpec((8, 128), lambda i: (0, 0)),
            pl.BlockSpec((1, 8), lambda i: (0, 0)),
            pl.BlockSpec((1, 8), lambda i: (0, 0)),
            pl.BlockSpec((512, 10), lambda i: (0, 0)),
            pl.BlockSpec((1, 10), lambda i: (0, 0)),
        ],
        out_specs=pl.BlockSpec((B, 10), lambda i: (0, 0)),
        compiler_params=pltpu.CompilerParams(dimension_semantics=("arbitrary",)),
    )(xk, wd, g, gt, gamma2, beta2, wf, bf)
    return out


def reference_forward(x, w_conv, b_conv, gamma, beta, w_fc, b_fc):
    """Pure-JAX reference matching the PyTorch forward (train-mode BN)."""
    y = jax.lax.conv_general_dilated(
        x, w_conv, (1, 1), ((1, 1), (1, 1)),
        dimension_numbers=("NCHW", "OIHW", "NCHW"))
    y = y + b_conv[None, :, None, None]
    mean = jnp.mean(y, axis=(0, 2, 3), keepdims=True)
    var = jnp.mean((y - mean) ** 2, axis=(0, 2, 3), keepdims=True)
    y = gamma[None, :, None, None] * (y - mean) * jax.lax.rsqrt(var + EPS) \
        + beta[None, :, None, None]
    y = jnp.maximum(y, 0.0)
    y = jax.lax.reduce_window(y, -jnp.inf, jax.lax.max,
                              (1, 1, 4, 4), (1, 1, 4, 4), "VALID")
    y = y.reshape(x.shape[0], -1)
    return y @ w_fc.T + b_fc


if __name__ == "__main__":
    key = jax.random.PRNGKey(0)
    k1, k2, k3, k4, k5, k6, kx = jax.random.split(key, 7)

    B = 2
    # Linear(64*8, 10) after MaxPool(4) with 8 channels implies 32x32 input.
    x = jax.random.normal(kx, (B, 3, 32, 32), dtype=jnp.float32)     # NCHW
    w_conv = 0.1 * jax.random.normal(k1, (8, 3, 3, 3), dtype=jnp.float32)
    b_conv = 0.1 * jax.random.normal(k2, (8,), dtype=jnp.float32)
    gamma = 1.0 + 0.1 * jax.random.normal(k5, (8,), dtype=jnp.float32)
    beta = 0.1 * jax.random.normal(k6, (8,), dtype=jnp.float32)
    w_fc = 0.05 * jax.random.normal(k3, (10, 512), dtype=jnp.float32)
    b_fc = 0.05 * jax.random.normal(k4, (10,), dtype=jnp.float32)

    out = simple_cnn_forward(x, w_conv, b_conv, gamma, beta, w_fc, b_fc)
    out = jax.block_until_ready(out)

    ref = reference_forward(x, w_conv, b_conv, gamma, beta, w_fc, b_fc)
    assert out.shape == (B, 10) and out.dtype == jnp.float32
    assert jnp.allclose(out, ref, atol=1e-3, rtol=1e-3), "mismatch vs reference"
    print("KERNEL_OK")
</pallas_src>

<mosaic_0001>
module attributes {stable_mosaic.version = 11 : i64} {
  func.func @_fused_cnn_kernel(%arg0: i32, %arg1: memref<32x2048xf32, #tpu.memory_space<vmem>>, %arg2: memref<512x128xf32, #tpu.memory_space<vmem>>, %arg3: memref<128x8xf32, #tpu.memory_space<vmem>>, %arg4: memref<8x128xf32, #tpu.memory_space<vmem>>, %arg5: memref<1x8xf32, #tpu.memory_space<vmem>>, %arg6: memref<1x8xf32, #tpu.memory_space<vmem>>, %arg7: memref<512x10xf32, #tpu.memory_space<vmem>>, %arg8: memref<1x10xf32, #tpu.memory_space<vmem>>, %arg9: memref<2x10xf32, #tpu.memory_space<vmem>>) attributes {dimension_semantics = [#tpu.dimension_semantics<arbitrary>], iteration_bounds = array<i64: 1>, scalar_prefetch = 0 : i64, scratch_operands = 0 : i64, tpu.core_type = #tpu.core_type<tc>, window_params = [{pipeline_mode = #tpu.pipeline_mode<synchronous>, transform_indices = @transform_0, window_bounds = array<i64: 32, 2048>}, {pipeline_mode = #tpu.pipeline_mode<synchronous>, transform_indices = @transform_1, window_bounds = array<i64: 512, 128>}, {pipeline_mode = #tpu.pipeline_mode<synchronous>, transform_indices = @transform_2, window_bounds = array<i64: 128, 8>}, {pipeline_mode = #tpu.pipeline_mode<synchronous>, transform_indices = @transform_3, window_bounds = array<i64: 8, 128>}, {pipeline_mode = #tpu.pipeline_mode<synchronous>, transform_indices = @transform_4, window_bounds = array<i64: 1, 8>}, {pipeline_mode = #tpu.pipeline_mode<synchronous>, transform_indices = @transform_5, window_bounds = array<i64: 1, 8>}, {pipeline_mode = #tpu.pipeline_mode<synchronous>, transform_indices = @transform_6, window_bounds = array<i64: 512, 10>}, {pipeline_mode = #tpu.pipeline_mode<synchronous>, transform_indices = @transform_7, window_bounds = array<i64: 1, 10>}, {pipeline_mode = #tpu.pipeline_mode<synchronous>, transform_indices = @transform_8, window_bounds = array<i64: 2, 10>}]} {
    %cst = arith.constant 0.000000e+00 : f32
    %0 = vector.broadcast %cst : f32 to vector<1x128xf32>
    %cst_0 = arith.constant 0.000000e+00 : f32
    %1 = vector.broadcast %cst_0 : f32 to vector<1x128xf32>
    %c0 = arith.constant 0 : index
    %c0_1 = arith.constant 0 : index
    %2 = vector.load %arg1[%c0, %c0_1] : memref<32x2048xf32, #tpu.memory_space<vmem>>, vector<32x512xf32>
    %c0_2 = arith.constant 0 : index
    %c0_3 = arith.constant 0 : index
    %3 = vector.load %arg2[%c0_2, %c0_3] : memref<512x128xf32, #tpu.memory_space<vmem>>, vector<512x128xf32>
    %cst_4 = arith.constant dense<0.000000e+00> : vector<32x128xf32>
    %4 = tpu.matmul %2, %3, %cst_4 {dimension_numbers = #tpu.dot_dimension_numbers<[1], [0], [0], [1], [0, 0, 1, 1], [], []>} : vector<32x512xf32>, vector<512x128xf32>, vector<32x128xf32> -> vector<32x128xf32>
    %cst_5 = arith.constant dense<0.000000e+00> : vector<128xf32>
    %5 = vector.multi_reduction <add>, %4, %cst_5 [0] : vector<32x128xf32> to vector<128xf32>
    %6 = vector.shape_cast %5 : vector<128xf32> to vector<1x128xf32>
    %7 = arith.addf %0, %6 : vector<1x128xf32>
    %8 = arith.mulf %4, %4 : vector<32x128xf32>
    %cst_6 = arith.constant dense<0.000000e+00> : vector<128xf32>
    %9 = vector.multi_reduction <add>, %8, %cst_6 [0] : vector<32x128xf32> to vector<128xf32>
    %10 = vector.shape_cast %9 : vector<128xf32> to vector<1x128xf32>
    %11 = arith.addf %1, %10 : vector<1x128xf32>
    %c0_7 = arith.constant 0 : index
    %c512 = arith.constant 512 : index
    %12 = vector.load %arg1[%c0_7, %c512] : memref<32x2048xf32, #tpu.memory_space<vmem>>, vector<32x512xf32>
    %c0_8 = arith.constant 0 : index
    %c0_9 = arith.constant 0 : index
    %13 = vector.load %arg2[%c0_8, %c0_9] : memref<512x128xf32, #tpu.memory_space<vmem>>, vector<512x128xf32>
    %cst_10 = arith.constant dense<0.000000e+00> : vector<32x128xf32>
    %14 = tpu.matmul %12, %13, %cst_10 {dimension_numbers = #tpu.dot_dimension_numbers<[1], [0], [0], [1], [0, 0, 1, 1], [], []>} : vector<32x512xf32>, vector<512x128xf32>, vector<32x128xf32> -> vector<32x128xf32>
    %cst_11 = arith.constant dense<0.000000e+00> : vector<128xf32>
    %15 = vector.multi_reduction <add>, %14, %cst_11 [0] : vector<32x128xf32> to vector<128xf32>
    %16 = vector.shape_cast %15 : vector<128xf32> to vector<1x128xf32>
    %17 = arith.addf %7, %16 : vector<1x128xf32>
    %18 = arith.mulf %14, %14 : vector<32x128xf32>
    %cst_12 = arith.constant dense<0.000000e+00> : vector<128xf32>
    %19 = vector.multi_reduction <add>, %18, %cst_12 [0] : vector<32x128xf32> to vector<128xf32>
    %20 = vector.shape_cast %19 : vector<128xf32> to vector<1x128xf32>
    %21 = arith.addf %11, %20 : vector<1x128xf32>
    %c0_13 = arith.constant 0 : index
    %c1024 = arith.constant 1024 : index
    %22 = vector.load %arg1[%c0_13, %c1024] : memref<32x2048xf32, #tpu.memory_space<vmem>>, vector<32x512xf32>
    %c0_14 = arith.constant 0 : index
    %c0_15 = arith.constant 0 : index
    %23 = vector.load %arg2[%c0_14, %c0_15] : memref<512x128xf32, #tpu.memory_space<vmem>>, vector<512x128xf32>
    %cst_16 = arith.constant dense<0.000000e+00> : vector<32x128xf32>
    %24 = tpu.matmul %22, %23, %cst_16 {dimension_numbers = #tpu.dot_dimension_numbers<[1], [0], [0], [1], [0, 0, 1, 1], [], []>} : vector<32x512xf32>, vector<512x128xf32>, vector<32x128xf32> -> vector<32x128xf32>
    %cst_17 = arith.constant dense<0.000000e+00> : vector<128xf32>
    %25 = vector.multi_reduction <add>, %24, %cst_17 [0] : vector<32x128xf32> to vector<128xf32>
    %26 = vector.shape_cast %25 : vector<128xf32> to vector<1x128xf32>
    %27 = arith.addf %17, %26 : vector<1x128xf32>
    %28 = arith.mulf %24, %24 : vector<32x128xf32>
    %cst_18 = arith.constant dense<0.000000e+00> : vector<128xf32>
    %29 = vector.multi_reduction <add>, %28, %cst_18 [0] : vector<32x128xf32> to vector<128xf32>
    %30 = vector.shape_cast %29 : vector<128xf32> to vector<1x128xf32>
    %31 = arith.addf %21, %30 : vector<1x128xf32>
    %c0_19 = arith.constant 0 : index
    %c1536 = arith.constant 1536 : index
    %32 = vector.load %arg1[%c0_19, %c1536] : memref<32x2048xf32, #tpu.memory_space<vmem>>, vector<32x512xf32>
    %c0_20 = arith.constant 0 : index
    %c0_21 = arith.constant 0 : index
    %33 = vector.load %arg2[%c0_20, %c0_21] : memref<512x128xf32, #tpu.memory_space<vmem>>, vector<512x128xf32>
    %cst_22 = arith.constant dense<0.000000e+00> : vector<32x128xf32>
    %34 = tpu.matmul %32, %33, %cst_22 {dimension_numbers = #tpu.dot_dimension_numbers<[1], [0], [0], [1], [0, 0, 1, 1], [], []>} : vector<32x512xf32>, vector<512x128xf32>, vector<32x128xf32> -> vector<32x128xf32>
    %cst_23 = arith.constant dense<0.000000e+00> : vector<128xf32>
    %35 = vector.multi_reduction <add>, %34, %cst_23 [0] : vector<32x128xf32> to vector<128xf32>
    %36 = vector.shape_cast %35 : vector<128xf32> to vector<1x128xf32>
    %37 = arith.addf %27, %36 : vector<1x128xf32>
    %38 = arith.mulf %34, %34 : vector<32x128xf32>
    %cst_24 = arith.constant dense<0.000000e+00> : vector<128xf32>
    %39 = vector.multi_reduction <add>, %38, %cst_24 [0] : vector<32x128xf32> to vector<128xf32>
    %40 = vector.shape_cast %39 : vector<128xf32> to vector<1x128xf32>
    %41 = arith.addf %31, %40 : vector<1x128xf32>
    %c0_25 = arith.constant 0 : index
    %c0_26 = arith.constant 0 : index
    %42 = vector.load %arg3[%c0_25, %c0_26] : memref<128x8xf32, #tpu.memory_space<vmem>>, vector<128x8xf32>
    %cst_27 = arith.constant dense<0.000000e+00> : vector<1x8xf32>
    %43 = tpu.matmul %37, %42, %cst_27 {dimension_numbers = #tpu.dot_dimension_numbers<[1], [0], [0], [1], [0, 0, 1, 1], [], []>} : vector<1x128xf32>, vector<128x8xf32>, vector<1x8xf32> -> vector<1x8xf32>
    %c0_28 = arith.constant 0 : index
    %c0_29 = arith.constant 0 : index
    %44 = vector.load %arg3[%c0_28, %c0_29] : memref<128x8xf32, #tpu.memory_space<vmem>>, vector<128x8xf32>
    %cst_30 = arith.constant dense<0.000000e+00> : vector<1x8xf32>
    %45 = tpu.matmul %41, %44, %cst_30 {dimension_numbers = #tpu.dot_dimension_numbers<[1], [0], [0], [1], [0, 0, 1, 1], [], []>} : vector<1x128xf32>, vector<128x8xf32>, vector<1x8xf32> -> vector<1x8xf32>
    %cst_31 = arith.constant 4.8828125E-4 : f32
    %46 = vector.broadcast %cst_31 : f32 to vector<1x8xf32>
    %47 = arith.mulf %43, %46 : vector<1x8xf32>
    %cst_32 = arith.constant 4.8828125E-4 : f32
    %48 = vector.broadcast %cst_32 : f32 to vector<1x8xf32>
    %49 = arith.mulf %45, %48 : vector<1x8xf32>
    %50 = arith.mulf %47, %47 : vector<1x8xf32>
    %51 = arith.subf %49, %50 : vector<1x8xf32>
    %c0_33 = arith.constant 0 : index
    %c0_34 = arith.constant 0 : index
    %52 = vector.load %arg5[%c0_33, %c0_34] : memref<1x8xf32, #tpu.memory_space<vmem>>, vector<1x8xf32>
    %cst_35 = arith.constant 9.99999974E-6 : f32
    %53 = vector.broadcast %cst_35 : f32 to vector<1x8xf32>
    %54 = arith.addf %51, %53 : vector<1x8xf32>
    %55 = math.rsqrt %54 : vector<1x8xf32>
    %56 = arith.mulf %52, %55 : vector<1x8xf32>
    %c0_36 = arith.constant 0 : index
    %c0_37 = arith.constant 0 : index
    %57 = vector.load %arg6[%c0_36, %c0_37] : memref<1x8xf32, #tpu.memory_space<vmem>>, vector<1x8xf32>
    %58 = arith.mulf %47, %56 : vector<1x8xf32>
    %59 = arith.subf %57, %58 : vector<1x8xf32>
    %c0_38 = arith.constant 0 : index
    %c0_39 = arith.constant 0 : index
    %60 = vector.load %arg4[%c0_38, %c0_39] : memref<8x128xf32, #tpu.memory_space<vmem>>, vector<8x128xf32>
    %cst_40 = arith.constant dense<0.000000e+00> : vector<1x128xf32>
    %61 = tpu.matmul %56, %60, %cst_40 {dimension_numbers = #tpu.dot_dimension_numbers<[1], [0], [0], [1], [0, 0, 1, 1], [], []>} : vector<1x8xf32>, vector<8x128xf32>, vector<1x128xf32> -> vector<1x128xf32>
    %c0_41 = arith.constant 0 : index
    %c0_42 = arith.constant 0 : index
    %62 = vector.load %arg4[%c0_41, %c0_42] : memref<8x128xf32, #tpu.memory_space<vmem>>, vector<8x128xf32>
    %cst_43 = arith.constant dense<0.000000e+00> : vector<1x128xf32>
    %63 = tpu.matmul %59, %62, %cst_43 {dimension_numbers = #tpu.dot_dimension_numbers<[1], [0], [0], [1], [0, 0, 1, 1], [], []>} : vector<1x8xf32>, vector<8x128xf32>, vector<1x128xf32> -> vector<1x128xf32>
    %cst_44 = arith.constant 0.000000e+00 : f32
    %64 = vector.broadcast %cst_44 : f32 to vector<2x10xf32>
    %65 = vector.broadcast %61 : vector<1x128xf32> to vector<32x128xf32>
    %66 = arith.mulf %4, %65 : vector<32x128xf32>
    %67 = vector.broadcast %63 : vector<1x128xf32> to vector<32x128xf32>
    %68 = arith.addf %66, %67 : vector<32x128xf32>
    %cst_45 = arith.constant 0.000000e+00 : f32
    %69 = vector.broadcast %cst_45 : f32 to vector<32x128xf32>
    %70 = arith.maximumf %68, %69 : vector<32x128xf32>
    %71 = vector.extract_strided_slice %70 {offsets = [0, 0], sizes = [16, 128], strides = [1, 1]} : vector<32x128xf32> to vector<16x128xf32>
    %cst_46 = arith.constant dense<0xFF800000> : vector<128xf32>
    %72 = vector.multi_reduction <maximumf>, %71, %cst_46 [0] : vector<16x128xf32> to vector<128xf32>
    %73 = vector.shape_cast %72 : vector<128xf32> to vector<1x128xf32>
    %74 = vector.extract_strided_slice %70 {offsets = [16, 0], sizes = [16, 128], strides = [1, 1]} : vector<32x128xf32> to vector<16x128xf32>
    %cst_47 = arith.constant dense<0xFF800000> : vector<128xf32>
    %75 = vector.multi_reduction <maximumf>, %74, %cst_47 [0] : vector<16x128xf32> to vector<128xf32>
    %76 = vector.shape_cast %75 : vector<128xf32> to vector<1x128xf32>
    %77 = tpu.concatenate %73, %76 in 0 : vector<1x128xf32>, vector<1x128xf32> -> vector<2x128xf32>
    %c0_48 = arith.constant 0 : index
    %c0_49 = arith.constant 0 : index
    %78 = vector.load %arg7[%c0_48, %c0_49] : memref<512x10xf32, #tpu.memory_space<vmem>>, vector<128x10xf32>
    %cst_50 = arith.constant dense<0.000000e+00> : vector<2x10xf32>
    %79 = tpu.matmul %77, %78, %cst_50 {dimension_numbers = #tpu.dot_dimension_numbers<[1], [0], [0], [1], [0, 0, 1, 1], [], []>} : vector<2x128xf32>, vector<128x10xf32>, vector<2x10xf32> -> vector<2x10xf32>
    %80 = arith.addf %64, %79 : vector<2x10xf32>
    %81 = vector.broadcast %61 : vector<1x128xf32> to vector<32x128xf32>
    %82 = arith.mulf %14, %81 : vector<32x128xf32>
    %83 = vector.broadcast %63 : vector<1x128xf32> to vector<32x128xf32>
    %84 = arith.addf %82, %83 : vector<32x128xf32>
    %cst_51 = arith.constant 0.000000e+00 : f32
    %85 = vector.broadcast %cst_51 : f32 to vector<32x128xf32>
    %86 = arith.maximumf %84, %85 : vector<32x128xf32>
    %87 = vector.extract_strided_slice %86 {offsets = [0, 0], sizes = [16, 128], strides = [1, 1]} : vector<32x128xf32> to vector<16x128xf32>
    %cst_52 = arith.constant dense<0xFF800000> : vector<128xf32>
    %88 = vector.multi_reduction <maximumf>, %87, %cst_52 [0] : vector<16x128xf32> to vector<128xf32>
    %89 = vector.shape_cast %88 : vector<128xf32> to vector<1x128xf32>
    %90 = vector.extract_strided_slice %86 {offsets = [16, 0], sizes = [16, 128], strides = [1, 1]} : vector<32x128xf32> to vector<16x128xf32>
    %cst_53 = arith.constant dense<0xFF800000> : vector<128xf32>
    %91 = vector.multi_reduction <maximumf>, %90, %cst_53 [0] : vector<16x128xf32> to vector<128xf32>
    %92 = vector.shape_cast %91 : vector<128xf32> to vector<1x128xf32>
    %93 = tpu.concatenate %89, %92 in 0 : vector<1x128xf32>, vector<1x128xf32> -> vector<2x128xf32>
    %c128 = arith.constant 128 : index
    %c0_54 = arith.constant 0 : index
    %94 = vector.load %arg7[%c128, %c0_54] : memref<512x10xf32, #tpu.memory_space<vmem>>, vector<128x10xf32>
    %cst_55 = arith.constant dense<0.000000e+00> : vector<2x10xf32>
    %95 = tpu.matmul %93, %94, %cst_55 {dimension_numbers = #tpu.dot_dimension_numbers<[1], [0], [0], [1], [0, 0, 1, 1], [], []>} : vector<2x128xf32>, vector<128x10xf32>, vector<2x10xf32> -> vector<2x10xf32>
    %96 = arith.addf %80, %95 : vector<2x10xf32>
    %97 = vector.broadcast %61 : vector<1x128xf32> to vector<32x128xf32>
    %98 = arith.mulf %24, %97 : vector<32x128xf32>
    %99 = vector.broadcast %63 : vector<1x128xf32> to vector<32x128xf32>
    %100 = arith.addf %98, %99 : vector<32x128xf32>
    %cst_56 = arith.constant 0.000000e+00 : f32
    %101 = vector.broadcast %cst_56 : f32 to vector<32x128xf32>
    %102 = arith.maximumf %100, %101 : vector<32x128xf32>
    %103 = vector.extract_strided_slice %102 {offsets = [0, 0], sizes = [16, 128], strides = [1, 1]} : vector<32x128xf32> to vector<16x128xf32>
    %cst_57 = arith.constant dense<0xFF800000> : vector<128xf32>
    %104 = vector.multi_reduction <maximumf>, %103, %cst_57 [0] : vector<16x128xf32> to vector<128xf32>
    %105 = vector.shape_cast %104 : vector<128xf32> to vector<1x128xf32>
    %106 = vector.extract_strided_slice %102 {offsets = [16, 0], sizes = [16, 128], strides = [1, 1]} : vector<32x128xf32> to vector<16x128xf32>
    %cst_58 = arith.constant dense<0xFF800000> : vector<128xf32>
    %107 = vector.multi_reduction <maximumf>, %106, %cst_58 [0] : vector<16x128xf32> to vector<128xf32>
    %108 = vector.shape_cast %107 : vector<128xf32> to vector<1x128xf32>
    %109 = tpu.concatenate %105, %108 in 0 : vector<1x128xf32>, vector<1x128xf32> -> vector<2x128xf32>
    %c256 = arith.constant 256 : index
    %c0_59 = arith.constant 0 : index
    %110 = vector.load %arg7[%c256, %c0_59] : memref<512x10xf32, #tpu.memory_space<vmem>>, vector<128x10xf32>
    %cst_60 = arith.constant dense<0.000000e+00> : vector<2x10xf32>
    %111 = tpu.matmul %109, %110, %cst_60 {dimension_numbers = #tpu.dot_dimension_numbers<[1], [0], [0], [1], [0, 0, 1, 1], [], []>} : vector<2x128xf32>, vector<128x10xf32>, vector<2x10xf32> -> vector<2x10xf32>
    %112 = arith.addf %96, %111 : vector<2x10xf32>
    %113 = vector.broadcast %61 : vector<1x128xf32> to vector<32x128xf32>
    %114 = arith.mulf %34, %113 : vector<32x128xf32>
    %115 = vector.broadcast %63 : vector<1x128xf32> to vector<32x128xf32>
    %116 = arith.addf %114, %115 : vector<32x128xf32>
    %cst_61 = arith.constant 0.000000e+00 : f32
    %117 = vector.broadcast %cst_61 : f32 to vector<32x128xf32>
    %118 = arith.maximumf %116, %117 : vector<32x128xf32>
    %119 = vector.extract_strided_slice %118 {offsets = [0, 0], sizes = [16, 128], strides = [1, 1]} : vector<32x128xf32> to vector<16x128xf32>
    %cst_62 = arith.constant dense<0xFF800000> : vector<128xf32>
    %120 = vector.multi_reduction <maximumf>, %119, %cst_62 [0] : vector<16x128xf32> to vector<128xf32>
    %121 = vector.shape_cast %120 : vector<128xf32> to vector<1x128xf32>
    %122 = vector.extract_strided_slice %118 {offsets = [16, 0], sizes = [16, 128], strides = [1, 1]} : vector<32x128xf32> to vector<16x128xf32>
    %cst_63 = arith.constant dense<0xFF800000> : vector<128xf32>
    %123 = vector.multi_reduction <maximumf>, %122, %cst_63 [0] : vector<16x128xf32> to vector<128xf32>
    %124 = vector.shape_cast %123 : vector<128xf32> to vector<1x128xf32>
    %125 = tpu.concatenate %121, %124 in 0 : vector<1x128xf32>, vector<1x128xf32> -> vector<2x128xf32>
    %c384 = arith.constant 384 : index
    %c0_64 = arith.constant 0 : index
    %126 = vector.load %arg7[%c384, %c0_64] : memref<512x10xf32, #tpu.memory_space<vmem>>, vector<128x10xf32>
    %cst_65 = arith.constant dense<0.000000e+00> : vector<2x10xf32>
    %127 = tpu.matmul %125, %126, %cst_65 {dimension_numbers = #tpu.dot_dimension_numbers<[1], [0], [0], [1], [0, 0, 1, 1], [], []>} : vector<2x128xf32>, vector<128x10xf32>, vector<2x10xf32> -> vector<2x10xf32>
    %128 = arith.addf %112, %127 : vector<2x10xf32>
    %c0_66 = arith.constant 0 : index
    %c0_67 = arith.constant 0 : index
    %129 = vector.load %arg8[%c0_66, %c0_67] : memref<1x10xf32, #tpu.memory_space<vmem>>, vector<1x10xf32>
    %130 = vector.broadcast %129 : vector<1x10xf32> to vector<2x10xf32>
    %131 = arith.addf %128, %130 : vector<2x10xf32>
    %c0_68 = arith.constant 0 : index
    %c0_69 = arith.constant 0 : index
    %132 = vector.load %arg9[%c0_68, %c0_69] : memref<2x10xf32, #tpu.memory_space<vmem>>, vector<2x10xf32>
    tpu.vector_store %arg9[%c0_68, %c0_69], %131 {strides = array<i32>} : memref<2x10xf32, #tpu.memory_space<vmem>>, vector<2x10xf32>,
    return
  }
  func.func @transform_0(%arg0: i32) -> (i32, i32) {
    %c0_i32 = arith.constant 0 : i32
    %c0_i32_0 = arith.constant 0 : i32
    %c0_i32_1 = arith.constant 0 : i32
    return %c0_i32, %c0_i32_0 : i32, i32
  }
  func.func @transform_1(%arg0: i32) -> (i32, i32) {
    %c0_i32 = arith.constant 0 : i32
    %c0_i32_0 = arith.constant 0 : i32
    %c0_i32_1 = arith.constant 0 : i32
    return %c0_i32, %c0_i32_0 : i32, i32
  }
  func.func @transform_2(%arg0: i32) -> (i32, i32) {
    %c0_i32 = arith.constant 0 : i32
    %c0_i32_0 = arith.constant 0 : i32
    %c0_i32_1 = arith.constant 0 : i32
    return %c0_i32, %c0_i32_0 : i32, i32
  }
  func.func @transform_3(%arg0: i32) -> (i32, i32) {
    %c0_i32 = arith.constant 0 : i32
    %c0_i32_0 = arith.constant 0 : i32
    %c0_i32_1 = arith.constant 0 : i32
    return %c0_i32, %c0_i32_0 : i32, i32
  }
  func.func @transform_4(%arg0: i32) -> (i32, i32) {
    %c0_i32 = arith.constant 0 : i32
    %c0_i32_0 = arith.constant 0 : i32
    %c0_i32_1 = arith.constant 0 : i32
    return %c0_i32, %c0_i32_0 : i32, i32
  }
  func.func @transform_5(%arg0: i32) -> (i32, i32) {
    %c0_i32 = arith.constant 0 : i32
    %c0_i32_0 = arith.constant 0 : i32
    %c0_i32_1 = arith.constant 0 : i32
    return %c0_i32, %c0_i32_0 : i32, i32
  }
  func.func @transform_6(%arg0: i32) -> (i32, i32) {
    %c0_i32 = arith.constant 0 : i32
    %c0_i32_0 = arith.constant 0 : i32
    %c0_i32_1 = arith.constant 0 : i32
    return %c0_i32, %c0_i32_0 : i32, i32
  }
  func.func @transform_7(%arg0: i32) -> (i32, i32) {
    %c0_i32 = arith.constant 0 : i32
    %c0_i32_0 = arith.constant 0 : i32
    %c0_i32_1 = arith.constant 0 : i32
    return %c0_i32, %c0_i32_0 : i32, i32
  }
  func.func @transform_8(%arg0: i32) -> (i32, i32) {
    %c0_i32 = arith.constant 0 : i32
    %c0_i32_0 = arith.constant 0 : i32
    %c0_i32_1 = arith.constant 0 : i32
    return %c0_i32, %c0_i32_0 : i32, i32
  }
}

</mosaic_0001>

<bundles_post_ra>
// kernel: simple_cnn_forward.1
= control target key start
LH: loop header
LB: loop body
LE: loop exit
PB: predicated region body
PF: predicated region fallthrough
CT: control target
= control target key end

     0   :  { %s2341_s0 = inlined_call_operand.vmem [shape: f32[32,2048], index: 0, kind: input, shape index: {}]   ;;  %s2342_s1 = inlined_call_operand.vmem [shape: f32[512,128], index: 1, kind: input, shape index: {}]   ;;  %s2343_s2 = inlined_call_operand.vmem [shape: f32[128,8], index: 2, kind: input, shape index: {}]   ;;  %s2344_s3 = inlined_call_operand.vmem [shape: f32[8,128], index: 3, kind: input, shape index: {}]   ;;  %s2345_s4 = inlined_call_operand.vmem [shape: f32[1,8], index: 4, kind: input, shape index: {}]   ;;  %s2346_s5 = inlined_call_operand.vmem [shape: f32[1,8], index: 5, kind: input, shape index: {}]   ;;  %s2347_s6 = inlined_call_operand.vmem [shape: f32[512,10], index: 6, kind: input, shape index: {}]   ;;  %s2348_s7 = inlined_call_operand.vmem [shape: f32[1,10], index: 7, kind: input, shape index: {}]   ;;  %s2349_s8 = inlined_call_operand.hbm [shape: f32[2,10], index: 8, kind: output, shape index: {}]  }
   0x1   :  { %v1203_v0 = vld [vmem:[%s2342_s1 + $0x178] sm:$0xff]  ;;  %v1208_v1 = vld [vmem:[%s2342_s1 + $0x170] sm:$0xff]  ;;  %v1230_v5 = vld [vmem:[%s2342_s1 + $0x168] sm:$0xff] }
   0x2   :  { %v1213_v2 = vld [vmem:[%s2342_s1 + $0x1f8] sm:$0xff]  ;;  %168 = vmatpush.msra.mxu2 %v1203_v0  ;;  %v1237_v6 = vld [vmem:[%s2342_s1 + $0x1f0] sm:$0xff]  ;;  %v1254_v9 = vld [vmem:[%s2342_s1 + $0x1e8] sm:$0xff] }
   0x3   :  { %197 = vmatpush.msra.mxu3 %v1213_v2  ;;  %v1220_v3 = vld [vmem:[%s2342_s1 + $0x78] sm:$0xff]  ;;  %v1242_v7 = vld [vmem:[%s2342_s1 + $0x70] sm:$0xff]  ;;  %v1259_v10 = vld [vmem:[%s2342_s1 + $0x68] sm:$0xff] }
   0x4   :  { %v1225_v4 = vld [vmem:[%s2342_s1 + $0xf8] sm:$0xff]  ;;  %110 = vmatpush.msra.mxu0 %v1220_v3  ;;  %v1247_v8 = vld [vmem:[%s2342_s1 + $0xf0] sm:$0xff]  ;;  %169 = vmatpush.msra.mxu2 %v1208_v1  ;;  %v1266_v11 = vld [vmem:[%s2342_s1 + $0x160] sm:$0xff] }
   0x5   :  { %139 = vmatpush.msra.mxu1 %v1225_v4  ;;  %198 = vmatpush.msra.mxu3 %v1237_v6  ;;  %v1271_v12 = vld [vmem:[%s2342_s1 + $0xe8] sm:$0xff]  ;;  %v1276_v13 = vld [vmem:[%s2342_s1 + $0x1e0] sm:$0xff]  ;;  %v1295_v16 = vld [vmem:[%s2342_s1 + $0x158] sm:$0xff] }
   0x6   :  { %111 = vmatpush.msra.mxu0 %v1242_v7  ;;  %170 = vmatpush.msra.mxu2 %v1230_v5  ;;  %v1283_v14 = vld [vmem:[%s2342_s1 + $0x60] sm:$0xff]  ;;  %v1300_v17 = vld [vmem:[%s2342_s1 + $0x1d8] sm:$0xff]  ;;  %v1319_v20 = vld [vmem:[%s2342_s1 + $0x150] sm:$0xff] }
   0x7   :  { %140 = vmatpush.msra.mxu1 %v1247_v8  ;;  %199 = vmatpush.msra.mxu3 %v1254_v9  ;;  %v1288_v15 = vld [vmem:[%s2342_s1 + $0xe0] sm:$0xff]  ;;  %v1307_v18 = vld [vmem:[%s2342_s1 + $0x58] sm:$0xff]  ;;  %v1324_v21 = vld [vmem:[%s2342_s1 + $0x1d0] sm:$0xff] }
   0x8   :  { %112 = vmatpush.msra.mxu0 %v1259_v10  ;;  %171 = vmatpush.msra.mxu2 %v1266_v11  ;;  %v1312_v19 = vld [vmem:[%s2342_s1 + $0xd8] sm:$0xff]  ;;  %v1331_v22 = vld [vmem:[%s2342_s1 + $0x50] sm:$0xff]  ;;  %v1343_v24 = vld [vmem:[%s2342_s1 + $0x148] sm:$0xff] }
   0x9   :  { %141 = vmatpush.msra.mxu1 %v1271_v12  ;;  %200 = vmatpush.msra.mxu3 %v1276_v13  ;;  %v1336_v23 = vld [vmem:[%s2342_s1 + $0xd0] sm:$0xff]  ;;  %v1348_v25 = vld [vmem:[%s2342_s1 + $0x1c8] sm:$0xff]  ;;  %v1367_v28 = vld [vmem:[%s2342_s1 + $0x140] sm:$0xff] }
   0xa   :  { %113 = vmatpush.msra.mxu0 %v1283_v14  ;;  %172 = vmatpush.msra.mxu2 %v1295_v16  ;;  %v1355_v26 = vld [vmem:[%s2342_s1 + $0x48] sm:$0xff]  ;;  %v1372_v29 = vld [vmem:[%s2342_s1 + $0x1c0] sm:$0xff]  ;;  %v1391_v32 = vld [vmem:[%s2342_s1 + $0x138] sm:$0xff] }
   0xb   :  { %142 = vmatpush.msra.mxu1 %v1288_v15  ;;  %201 = vmatpush.msra.mxu3 %v1300_v17  ;;  %v1360_v27 = vld [vmem:[%s2342_s1 + $0xc8] sm:$0xff]  ;;  %v1379_v30 = vld [vmem:[%s2342_s1 + $0x40] sm:$0xff]  ;;  %v1396_v33 = vld [vmem:[%s2342_s1 + $0x1b8] sm:$0xff] }
   0xc   :  { %114 = vmatpush.msra.mxu0 %v1307_v18  ;;  %173 = vmatpush.msra.mxu2 %v1319_v20  ;;  %v1384_v31 = vld [vmem:[%s2342_s1 + $0xc0] sm:$0xff]  ;;  %v1403_v34 = vld [vmem:[%s2342_s1 + $0x38] sm:$0xff]  ;;  %v1415_v36 = vld [vmem:[%s2342_s1 + $0x130] sm:$0xff] }
   0xd   :  { %143 = vmatpush.msra.mxu1 %v1312_v19  ;;  %202 = vmatpush.msra.mxu3 %v1324_v21  ;;  %v1408_v35 = vld [vmem:[%s2342_s1 + $0xb8] sm:$0xff]  ;;  %v1420_v37 = vld [vmem:[%s2342_s1 + $0x1b0] sm:$0xff]  ;;  %v1439_v40 = vld [vmem:[%s2342_s1 + $0x128] sm:$0xff] }
   0xe   :  { %115 = vmatpush.msra.mxu0 %v1331_v22  ;;  %174 = vmatpush.msra.mxu2 %v1343_v24  ;;  %v1427_v38 = vld [vmem:[%s2342_s1 + $0x30] sm:$0xff]  ;;  %v1444_v41 = vld [vmem:[%s2342_s1 + $0x1a8] sm:$0xff]  ;;  %v1463_v44 = vld [vmem:[%s2342_s1 + $0x120] sm:$0xff] }
   0xf   :  { %144 = vmatpush.msra.mxu1 %v1336_v23  ;;  %203 = vmatpush.msra.mxu3 %v1348_v25  ;;  %v1432_v39 = vld [vmem:[%s2342_s1 + $0xb0] sm:$0xff]  ;;  %v1451_v42 = vld [vmem:[%s2342_s1 + $0x28] sm:$0xff]  ;;  %v1468_v45 = vld [vmem:[%s2342_s1 + $0x1a0] sm:$0xff] }
  0x10   :  { %116 = vmatpush.msra.mxu0 %v1355_v26  ;;  %175 = vmatpush.msra.mxu2 %v1367_v28  ;;  %v1456_v43 = vld [vmem:[%s2342_s1 + $0xa8] sm:$0xff]  ;;  %v1475_v46 = vld [vmem:[%s2342_s1 + $0x20] sm:$0xff]  ;;  %v1487_v48 = vld [vmem:[%s2342_s1 + $0x118] sm:$0xff] }
  0x11   :  { %145 = vmatpush.msra.mxu1 %v1360_v27  ;;  %204 = vmatpush.msra.mxu3 %v1372_v29  ;;  %2367 = vst [vmem:[#allocation5_spill] sm:$0xff] %v1475_v46  ;;  %v1480_v47 = vld [vmem:[%s2342_s1 + $0xa0] sm:$0xff]  ;;  %v1492_v49 = vld [vmem:[%s2342_s1 + $0x198] sm:$0xff]  ;;  %v1511_v52 = vld [vmem:[%s2342_s1 + $0x110] sm:$0xff] }
  0x12   :  { %117 = vmatpush.msra.mxu0 %v1379_v30  ;;  %176 = vmatpush.msra.mxu2 %v1391_v32  ;;  %2368 = vst [vmem:[#allocation6_spill] sm:$0xff] %v1480_v47  ;;  %v1499_v50 = vld [vmem:[%s2342_s1 + $0x18] sm:$0xff]  ;;  %v1516_v53 = vld [vmem:[%s2342_s1 + $0x190] sm:$0xff] }
  0x13   :  { %146 = vmatpush.msra.mxu1 %v1384_v31  ;;  %205 = vmatpush.msra.mxu3 %v1396_v33  ;;  %v1504_v51 = vld [vmem:[%s2342_s1 + $0x98] sm:$0xff]  ;;  %2369 = vst [vmem:[#allocation7_spill] sm:$0xff] %v1516_v53  ;;  %v1521_v54 = vld [vmem:[%s2342_s1 + $0x10] sm:$0xff] }
  0x14   :  { %118 = vmatpush.msra.mxu0 %v1403_v34  ;;  %177 = vmatpush.msra.mxu2 %v1415_v36  ;;  %2370 = vst [vmem:[#allocation8_spill] sm:$0xff] %v1521_v54  ;;  %v1528_v55 = vld [vmem:[%s2342_s1 + $0x90] sm:$0xff] }
  0x15   :  { %147 = vmatpush.msra.mxu1 %v1408_v35  ;;  %206 = vmatpush.msra.mxu3 %v1420_v37  ;;  %2371 = vst [vmem:[#allocation9_spill] sm:$0xff] %v1528_v55 }
  0x16   :  { %119 = vmatpush.msra.mxu0 %v1427_v38  ;;  %178 = vmatpush.msra.mxu2 %v1439_v40 }
  0x17   :  { %148 = vmatpush.msra.mxu1 %v1432_v39  ;;  %207 = vmatpush.msra.mxu3 %v1444_v41 }
  0x18   :  { %120 = vmatpush.msra.mxu0 %v1451_v42  ;;  %179 = vmatpush.msra.mxu2 %v1463_v44 }
  0x19   :  { %149 = vmatpush.msra.mxu1 %v1456_v43  ;;  %208 = vmatpush.msra.mxu3 %v1468_v45 }
  0x1a   :  { %121 = vmatpush.msra.mxu0 %v1475_v46  ;;  %180 = vmatpush.msra.mxu2 %v1487_v48 }
  0x1b   :  { %150 = vmatpush.msra.mxu1 %v1480_v47  ;;  %209 = vmatpush.msra.mxu3 %v1492_v49 }
  0x1c   :  { %13 = vsyncpa [#allocation3], 0  ;;  %122 = vmatpush.msra.mxu0 %v1499_v50  ;;  %v1535_v56 = vld [vmem:[%s2342_s1 + $0x108] sm:$0xff]  ;;  %181 = vmatpush.msra.mxu2 %v1511_v52  ;;  %v1559_v60 = vld [vmem:[%s2342_s1 + $0x100] sm:$0xff]  ;;  %vm795_vm3 = vcmask 64512   ;;  %vm870_vm4 = vcmask 1040384  }
  0x1d   :  { %151 = vmatpush.msra.mxu1 %v1504_v51  ;;  %v1540_v57 = vld [vmem:[%s2342_s1 + $0x188] sm:$0xff]  ;;  %210 = vmatpush.msra.mxu3 %v1516_v53  ;;  %v1564_v61 = vld [vmem:[%s2342_s1 + $0x180] sm:$0xff]  ;;  %v32_v62 = vld [vmem:[%s2341_s0 + $0x10] sm:$0xff]  ;;  %s1154_s17 = smov [#allocation2]   ;;  %s1113_s20 = sshll.u32 %s2349_s8, 4  ;;  %vm1104_vm5 = vcmask 74752   ;;  %s1114_s20 = int_to_ptr.hbm [resolvable:$true] %s1113_s20 }
  0x1e   :  { %2372 = vst [vmem:[#allocation10_spill] sm:$0xff] %v1540_v57  ;;  %v1547_v58 = vld [vmem:[%s2342_s1 + $0x8] sm:$0xff]  ;;  %123 = vmatpush.msra.mxu0 %v1521_v54  ;;  %182 = vmatpush.msra.mxu2 %v1535_v56  ;;  %v33_v63 = vld [vmem:[%s2341_s0 + $0x18] sm:$0xff]  ;;  %s1111_s18 = sshll.u32 %s1154_s17, 4  ;;  %s1112_s18 = int_to_ptr.vmem [resolvable:$true] %s1111_s18 }
  0x1f   :  { %v1552_v59 = vld [vmem:[%s2342_s1 + $0x88] sm:$0xff]  ;;  %152 = vmatpush.msra.mxu1 %v1528_v55  ;;  %2374 = vst [vmem:[#allocation12_spill] sm:$0xff] %v1564_v61  ;;  %211 = vmatpush.msra.mxu3 %v1540_v57  ;;  %v1581_v57 = vld [vmem:[%s2342_s1] sm:$0xff] }
  0x20   :  { %2373 = vst [vmem:[#allocation11_spill] sm:$0xff] %v1552_v59  ;;  %124 = vmatpush.msra.mxu0 %v1547_v58  ;;  %183 = vmatpush.msra.mxu2 %v1559_v60  ;;  %v1586_v55 = vld [vmem:[%s2342_s1 + $0x80] sm:$0xff] }
  0x21   :  { %153 = vmatpush.msra.mxu1 %v1552_v59  ;;  %212 = vmatpush.msra.mxu3 %v1564_v61  ;;  %2375 = vst [vmem:[#allocation13_spill] sm:$0xff] %v1586_v55  ;;  %v30_v59 = vld [vmem:[%s2341_s0] sm:$0xff]  ;;  %v31_v61 = vld [vmem:[%s2341_s0 + $0x8] sm:$0xff] }
  0x22   :  { %184 = vmatmul.f32.vlgmr.msra.gmra.mxu2 %v32_v62  ;;  %213 = vmatmul.f32.vlgmr.msra.gmra.mxu3 %v33_v63  ;;  %v36_v62 = vld [vmem:[%s2341_s0 + $0x90] sm:$0xff]  ;;  %v35_v63 = vld [vmem:[%s2341_s0 + $0x88] sm:$0xff] }
  0x23   :  { %324 = vmatpush.msrb.mxu2 %v1203_v0  ;;  %353 = vmatpush.msrb.mxu3 %v1213_v2 }
  0x24   :  { %125 = vmatpush.msra.mxu0 %v1581_v57  ;;  %154 = vmatpush.msra.mxu1 %v1586_v55 }
  0x25   :  { %325 = vmatpush.msrb.mxu2 %v1208_v1  ;;  %126 = vmatmul.f32.vlgmr.msra.gmra.mxu0 %v30_v59  ;;  %v37_v59 = vld [vmem:[%s2341_s0 + $0x98] sm:$0xff] }
  0x26   :  { %155 = vmatmul.f32.vlgmr.msra.gmra.mxu1 %v31_v61  ;;  %266 = vmatpush.msrb.mxu0 %v1220_v3  ;;  %v34_v61 = vld [vmem:[%s2341_s0 + $0x80] sm:$0xff] }
  0x27   :  { %295 = vmatpush.msrb.mxu1 %v1225_v4  ;;  %326 = vmatpush.msrb.mxu2 %v1230_v5 }
  0x28   :  { %354 = vmatpush.msrb.mxu3 %v1237_v6  ;;  %267 = vmatpush.msrb.mxu0 %v1242_v7 }
  0x29   :  { %296 = vmatpush.msrb.mxu1 %v1247_v8  ;;  %327 = vmatpush.msrb.mxu2 %v1266_v11 }
  0x2a   :  { %355 = vmatpush.msrb.mxu3 %v1254_v9  ;;  %187 = vmatmul.f32.gmra.mxu2 %v36_v62  ;;  %v40_v62 = vld [vmem:[%s2341_s0 + $0x110] sm:$0xff] }
  0x2b   :  { %268 = vmatpush.msrb.mxu0 %v1259_v10  ;;  %297 = vmatpush.msrb.mxu1 %v1271_v12 }
  0x2c   :  { %328 = vmatpush.msrb.mxu2 %v1295_v16  ;;  %356 = vmatpush.msrb.mxu3 %v1276_v13 }
  0x2d   :  { %216 = vmatmul.f32.gmra.mxu3 %v37_v59  ;;  %269 = vmatpush.msrb.mxu0 %v1283_v14  ;;  %v41_v59 = vld [vmem:[%s2341_s0 + $0x118] sm:$0xff] }
  0x2e   :  { %298 = vmatpush.msrb.mxu1 %v1288_v15  ;;  %329 = vmatpush.msrb.mxu2 %v1319_v20 }
  0x2f   :  { %357 = vmatpush.msrb.mxu3 %v1300_v17  ;;  %129 = vmatmul.f32.gmra.mxu0 %v34_v61  ;;  %v38_v61 = vld [vmem:[%s2341_s0 + $0x100] sm:$0xff] }
  0x30   :  { %158 = vmatmul.f32.gmra.mxu1 %v35_v63  ;;  %270 = vmatpush.msrb.mxu0 %v1307_v18  ;;  %v39_v63 = vld [vmem:[%s2341_s0 + $0x108] sm:$0xff] }
  0x31   :  { %299 = vmatpush.msrb.mxu1 %v1312_v19  ;;  %330 = vmatpush.msrb.mxu2 %v1343_v24 }
  0x32   :  { %358 = vmatpush.msrb.mxu3 %v1324_v21  ;;  %271 = vmatpush.msrb.mxu0 %v1331_v22 }
  0x33   :  { %300 = vmatpush.msrb.mxu1 %v1336_v23  ;;  %331 = vmatpush.msrb.mxu2 %v1367_v28 }
  0x34   :  { %359 = vmatpush.msrb.mxu3 %v1348_v25  ;;  %190 = vmatmul.f32.gmra.mxu2 %v40_v62  ;;  %v44_v62 = vld [vmem:[%s2341_s0 + $0x190] sm:$0xff] }
  0x35   :  { %272 = vmatpush.msrb.mxu0 %v1355_v26  ;;  %301 = vmatpush.msrb.mxu1 %v1360_v27 }
  0x36   :  { %332 = vmatpush.msrb.mxu2 %v1391_v32  ;;  %360 = vmatpush.msrb.mxu3 %v1372_v29 }
  0x37   :  { %219 = vmatmul.f32.gmra.mxu3 %v41_v59  ;;  %273 = vmatpush.msrb.mxu0 %v1379_v30  ;;  %v45_v59 = vld [vmem:[%s2341_s0 + $0x198] sm:$0xff] }
  0x38   :  { %302 = vmatpush.msrb.mxu1 %v1384_v31  ;;  %333 = vmatpush.msrb.mxu2 %v1415_v36 }
  0x39   :  { %361 = vmatpush.msrb.mxu3 %v1396_v33  ;;  %132 = vmatmul.f32.gmra.mxu0 %v38_v61  ;;  %v42_v61 = vld [vmem:[%s2341_s0 + $0x180] sm:$0xff] }
  0x3a   :  { %161 = vmatmul.f32.gmra.mxu1 %v39_v63  ;;  %274 = vmatpush.msrb.mxu0 %v1403_v34  ;;  %v43_v63 = vld [vmem:[%s2341_s0 + $0x188] sm:$0xff] }
  0x3b   :  { %303 = vmatpush.msrb.mxu1 %v1408_v35  ;;  %334 = vmatpush.msrb.mxu2 %v1439_v40 }
  0x3c   :  { %362 = vmatpush.msrb.mxu3 %v1420_v37  ;;  %275 = vmatpush.msrb.mxu0 %v1427_v38 }
  0x3d   :  { %304 = vmatpush.msrb.mxu1 %v1432_v39  ;;  %335 = vmatpush.msrb.mxu2 %v1463_v44 }
  0x3e   :  { %363 = vmatpush.msrb.mxu3 %v1444_v41  ;;  %193 = vmatmul.f32.gmra.mxu2 %v44_v62  ;;  %v252_v62 = vld [vmem:[%s2341_s0 + $0x30] sm:$0xff] }
  0x3f   :  { %276 = vmatpush.msrb.mxu0 %v1451_v42  ;;  %305 = vmatpush.msrb.mxu1 %v1456_v43 }
  0x40   :  { %336 = vmatpush.msrb.mxu2 %v1487_v48  ;;  %364 = vmatpush.msrb.mxu3 %v1468_v45 }
  0x41   :  { %222 = vmatmul.f32.gmra.mxu3 %v45_v59  ;;  %277 = vmatpush.msrb.mxu0 %v1475_v46  ;;  %v2376_v59 = vld [vmem:[#allocation9_spill] sm:$0xff] }
  0x42   :  { %306 = vmatpush.msrb.mxu1 %v1480_v47  ;;  %337 = vmatpush.msrb.mxu2 %v1511_v52 }
  0x43   :  { %365 = vmatpush.msrb.mxu3 %v1492_v49  ;;  %135 = vmatmul.f32.gmra.mxu0 %v42_v61  ;;  %v2377_v61 = vld [vmem:[#allocation10_spill] sm:$0xff] }
  0x44   :  { %164 = vmatmul.f32.gmra.mxu1 %v43_v63  ;;  %278 = vmatpush.msrb.mxu0 %v1499_v50  ;;  %v2378_v63 = vld [vmem:[#allocation11_spill] sm:$0xff] }
  0x45   :  { %307 = vmatpush.msrb.mxu1 %v1504_v51  ;;  %338 = vmatpush.msrb.mxu2 %v1535_v56 }
  0x46   :  { %366 = vmatpush.msrb.mxu3 %v1516_v53  ;;  %279 = vmatpush.msrb.mxu0 %v1521_v54  ;;  %v253_v53 = vld [vmem:[%s2341_s0 + $0x38] sm:$0xff] }
  0x47   :  { %308 = vmatpush.msrb.mxu1 %v2376_v59  ;;  %339 = vmatpush.msrb.mxu2 %v1559_v60  ;;  %v2379_v54 = vld [vmem:[#allocation12_spill] sm:$0xff] }
  0x48   :  { %367 = vmatpush.msrb.mxu3 %v2377_v61  ;;  %280 = vmatpush.msrb.mxu0 %v1547_v58  ;;  %v250_v59 = vld [vmem:[%s2341_s0 + $0x20] sm:$0xff] }
  0x49   :  { %309 = vmatpush.msrb.mxu1 %v2378_v63  ;;  %340 = vmatmul.f32.vlgmr.msrb.gmra.mxu2 %v252_v62  ;;  %v251_v62 = vld [vmem:[%s2341_s0 + $0x28] sm:$0xff] }
  0x4a   :  { %368 = vmatpush.msrb.mxu3 %v2379_v54  ;;  %480 = vmatpush.msra.mxu2 %v1203_v0 }
  0x4b   :  { %281 = vmatpush.msrb.mxu0 %v1581_v57  ;;  %310 = vmatpush.msrb.mxu1 %v1586_v55  ;;  %v256_v55 = vld [vmem:[%s2341_s0 + $0xb0] sm:$0xff] }
  0x4c   :  { %369 = vmatmul.f32.vlgmr.msrb.gmra.mxu3 %v253_v53  ;;  %481 = vmatpush.msra.mxu2 %v1208_v1  ;;  %v257_v53 = vld [vmem:[%s2341_s0 + $0xb8] sm:$0xff] }
  0x4d   :  { %509 = vmatpush.msra.mxu3 %v1213_v2  ;;  %282 = vmatmul.f32.vlgmr.msrb.gmra.mxu0 %v250_v59  ;;  %v254_v59 = vld [vmem:[%s2341_s0 + $0xa0] sm:$0xff] }
  0x4e   :  { %311 = vmatmul.f32.vlgmr.msrb.gmra.mxu1 %v251_v62  ;;  %422 = vmatpush.msra.mxu0 %v1220_v3  ;;  %v260_v62 = vld [vmem:[%s2341_s0 + $0x130] sm:$0xff] }
  0x4f   :  { %451 = vmatpush.msra.mxu1 %v1225_v4  ;;  %482 = vmatpush.msra.mxu2 %v1230_v5 }
  0x50   :  { %510 = vmatpush.msra.mxu3 %v1237_v6  ;;  %423 = vmatpush.msra.mxu0 %v1242_v7 }
  0x51   :  { %452 = vmatpush.msra.mxu1 %v1247_v8  ;;  %483 = vmatpush.msra.mxu2 %v1266_v11 }
  0x52   :  { %511 = vmatpush.msra.mxu3 %v1254_v9  ;;  %343 = vmatmul.f32.gmra.mxu2 %v256_v55  ;;  %v255_v55 = vld [vmem:[%s2341_s0 + $0xa8] sm:$0xff] }
  0x53   :  { %424 = vmatpush.msra.mxu0 %v1259_v10  ;;  %453 = vmatpush.msra.mxu1 %v1271_v12 }
  0x54   :  { %484 = vmatpush.msra.mxu2 %v1295_v16  ;;  %512 = vmatpush.msra.mxu3 %v1276_v13 }
  0x55   :  { %372 = vmatmul.f32.gmra.mxu3 %v257_v53  ;;  %425 = vmatpush.msra.mxu0 %v1283_v14  ;;  %v261_v53 = vld [vmem:[%s2341_s0 + $0x138] sm:$0xff] }
  0x56   :  { %454 = vmatpush.msra.mxu1 %v1288_v15  ;;  %485 = vmatpush.msra.mxu2 %v1319_v20 }
  0x57   :  { %513 = vmatpush.msra.mxu3 %v1300_v17  ;;  %285 = vmatmul.f32.gmra.mxu0 %v254_v59  ;;  %v258_v59 = vld [vmem:[%s2341_s0 + $0x120] sm:$0xff] }
  0x58   :  { %314 = vmatmul.f32.gmra.mxu1 %v255_v55  ;;  %426 = vmatpush.msra.mxu0 %v1307_v18  ;;  %v259_v55 = vld [vmem:[%s2341_s0 + $0x128] sm:$0xff] }
  0x59   :  { %455 = vmatpush.msra.mxu1 %v1312_v19  ;;  %486 = vmatpush.msra.mxu2 %v1343_v24 }
  0x5a   :  { %514 = vmatpush.msra.mxu3 %v1324_v21  ;;  %427 = vmatpush.msra.mxu0 %v1331_v22 }
  0x5b   :  { %456 = vmatpush.msra.mxu1 %v1336_v23  ;;  %487 = vmatpush.msra.mxu2 %v1367_v28 }
  0x5c   :  { %515 = vmatpush.msra.mxu3 %v1348_v25  ;;  %346 = vmatmul.f32.gmra.mxu2 %v260_v62  ;;  %v264_v62 = vld [vmem:[%s2341_s0 + $0x1b0] sm:$0xff] }
  0x5d   :  { %428 = vmatpush.msra.mxu0 %v1355_v26  ;;  %457 = vmatpush.msra.mxu1 %v1360_v27 }
  0x5e   :  { %488 = vmatpush.msra.mxu2 %v1391_v32  ;;  %516 = vmatpush.msra.mxu3 %v1372_v29 }
  0x5f   :  { %375 = vmatmul.f32.gmra.mxu3 %v261_v53  ;;  %429 = vmatpush.msra.mxu0 %v1379_v30  ;;  %v265_v53 = vld [vmem:[%s2341_s0 + $0x1b8] sm:$0xff] }
  0x60   :  { %458 = vmatpush.msra.mxu1 %v1384_v31  ;;  %489 = vmatpush.msra.mxu2 %v1415_v36 }
  0x61   :  { %517 = vmatpush.msra.mxu3 %v1396_v33  ;;  %288 = vmatmul.f32.gmra.mxu0 %v258_v59  ;;  %v262_v59 = vld [vmem:[%s2341_s0 + $0x1a0] sm:$0xff] }
  0x62   :  { %317 = vmatmul.f32.gmra.mxu1 %v259_v55  ;;  %430 = vmatpush.msra.mxu0 %v1403_v34  ;;  %v263_v55 = vld [vmem:[%s2341_s0 + $0x1a8] sm:$0xff] }
  0x63   :  { %459 = vmatpush.msra.mxu1 %v1408_v35  ;;  %490 = vmatpush.msra.mxu2 %v1439_v40 }
  0x64   :  { %518 = vmatpush.msra.mxu3 %v1420_v37  ;;  %431 = vmatpush.msra.mxu0 %v1427_v38 }
  0x65   :  { %460 = vmatpush.msra.mxu1 %v1432_v39  ;;  %491 = vmatpush.msra.mxu2 %v1463_v44 }
  0x66   :  { %519 = vmatpush.msra.mxu3 %v1444_v41  ;;  %349 = vmatmul.f32.gmra.mxu2 %v264_v62  ;;  %v2380_v62 = vld [vmem:[#allocation7_spill] sm:$0xff] }
  0x67   :  { %432 = vmatpush.msra.mxu0 %v1451_v42  ;;  %461 = vmatpush.msra.mxu1 %v1456_v43 }
  0x68   :  { %492 = vmatpush.msra.mxu2 %v1487_v48  ;;  %520 = vmatpush.msra.mxu3 %v1468_v45 }
  0x69   :  { %378 = vmatmul.f32.gmra.mxu3 %v265_v53  ;;  %433 = vmatpush.msra.mxu0 %v1475_v46  ;;  %v2381_v53 = vld [vmem:[#allocation8_spill] sm:$0xff]  ;;  %v2382_v46 = vld [vmem:[#allocation9_spill] sm:$0xff] }
  0x6a   :  { %462 = vmatpush.msra.mxu1 %v1480_v47  ;;  %493 = vmatpush.msra.mxu2 %v1511_v52  ;;  %v408_v47 = vld [vmem:[%s2341_s0 + $0x50] sm:$0xff] }
  0x6b   :  { %521 = vmatpush.msra.mxu3 %v1492_v49  ;;  %291 = vmatmul.f32.gmra.mxu0 %v262_v59  ;;  %v409_v59 = vld [vmem:[%s2341_s0 + $0x58] sm:$0xff] }
  0x6c   :  { %320 = vmatmul.f32.gmra.mxu1 %v263_v55  ;;  %434 = vmatpush.msra.mxu0 %v1499_v50  ;;  %v406_v55 = vld [vmem:[%s2341_s0 + $0x40] sm:$0xff] }
  0x6d   :  { %463 = vmatpush.msra.mxu1 %v1504_v51  ;;  %494 = vmatpush.msra.mxu2 %v1535_v56 }
  0x6e   :  { %522 = vmatpush.msra.mxu3 %v2380_v62  ;;  %435 = vmatpush.msra.mxu0 %v2381_v53 }
  0x6f   :  { %464 = vmatpush.msra.mxu1 %v2382_v46  ;;  %495 = vmatpush.msra.mxu2 %v1559_v60 }
  0x70   :  { %523 = vmatpush.msra.mxu3 %v2377_v61  ;;  %436 = vmatpush.msra.mxu0 %v1547_v58  ;;  %v2383_v61 = vld [vmem:[#allocation13_spill] sm:$0xff] }
  0x71   :  { %465 = vmatpush.msra.mxu1 %v2378_v63  ;;  %496 = vmatmul.f32.vlgmr.msra.gmra.mxu2 %v408_v47  ;;  %v407_v47 = vld [vmem:[%s2341_s0 + $0x48] sm:$0xff] }
  0x72   :  { %524 = vmatpush.msra.mxu3 %v2379_v54  ;;  %636 = vmatpush.msrb.mxu2 %v1203_v0  ;;  %v412_v0 = vld [vmem:[%s2341_s0 + $0xd0] sm:$0xff] }
  0x73   :  { %437 = vmatpush.msra.mxu0 %v1581_v57  ;;  %466 = vmatpush.msra.mxu1 %v2383_v61 }
  0x74   :  { %525 = vmatmul.f32.vlgmr.msra.gmra.mxu3 %v409_v59  ;;  %637 = vmatpush.msrb.mxu2 %v1208_v1  ;;  %v413_v1 = vld [vmem:[%s2341_s0 + $0xd8] sm:$0xff] }
  0x75   :  { %665 = vmatpush.msrb.mxu3 %v1213_v2  ;;  %438 = vmatmul.f32.vlgmr.msra.gmra.mxu0 %v406_v55  ;;  %v410_v2 = vld [vmem:[%s2341_s0 + $0xc0] sm:$0xff] }
  0x76   :  { %467 = vmatmul.f32.vlgmr.msra.gmra.mxu1 %v407_v47  ;;  %578 = vmatpush.msrb.mxu0 %v1220_v3  ;;  %v411_v3 = vld [vmem:[%s2341_s0 + $0xc8] sm:$0xff] }
  0x77   :  { %607 = vmatpush.msrb.mxu1 %v1225_v4  ;;  %638 = vmatpush.msrb.mxu2 %v1230_v5  ;;  %v416_v4 = vld [vmem:[%s2341_s0 + $0x150] sm:$0xff]  ;;  %v417_v5 = vld [vmem:[%s2341_s0 + $0x158] sm:$0xff] }
  0x78   :  { %666 = vmatpush.msrb.mxu3 %v1237_v6  ;;  %579 = vmatpush.msrb.mxu0 %v1242_v7  ;;  %v414_v6 = vld [vmem:[%s2341_s0 + $0x140] sm:$0xff]  ;;  %v415_v7 = vld [vmem:[%s2341_s0 + $0x148] sm:$0xff] }
  0x79   :  { %608 = vmatpush.msrb.mxu1 %v1247_v8  ;;  %639 = vmatpush.msrb.mxu2 %v1266_v11  ;;  %v420_v8 = vld [vmem:[%s2341_s0 + $0x1d0] sm:$0xff]  ;;  %v2384_v11 = vld [vmem:[#allocation5_spill] sm:$0xff] }
  0x7a   :  { %667 = vmatpush.msrb.mxu3 %v1254_v9  ;;  %499 = vmatmul.f32.gmra.mxu2 %v412_v0  ;;  %v421_v9 = vld [vmem:[%s2341_s0 + $0x1d8] sm:$0xff] }
  0x7b   :  { %580 = vmatpush.msrb.mxu0 %v1259_v10  ;;  %609 = vmatpush.msrb.mxu1 %v1271_v12  ;;  %v418_v10 = vld [vmem:[%s2341_s0 + $0x1c0] sm:$0xff]  ;;  %v419_v12 = vld [vmem:[%s2341_s0 + $0x1c8] sm:$0xff] }
  0x7c   :  { %640 = vmatpush.msrb.mxu2 %v1295_v16  ;;  %668 = vmatpush.msrb.mxu3 %v1276_v13  ;;  %v2385_v13 = vld [vmem:[#allocation6_spill] sm:$0xff]  ;;  %v565_v16 = vld [vmem:[%s2341_s0 + $0x78] sm:$0xff] }
  0x7d   :  { %528 = vmatmul.f32.gmra.mxu3 %v413_v1  ;;  %581 = vmatpush.msrb.mxu0 %v1283_v14  ;;  %v564_v14 = vld [vmem:[%s2341_s0 + $0x70] sm:$0xff] }
  0x7e   :  { %610 = vmatpush.msrb.mxu1 %v1288_v15  ;;  %641 = vmatpush.msrb.mxu2 %v1319_v20  ;;  %v2386_v15 = vld [vmem:[#allocation10_spill] sm:$0xff]  ;;  %v569_v20 = vld [vmem:[%s2341_s0 + $0xf8] sm:$0xff] }
  0x7f   :  { %669 = vmatpush.msrb.mxu3 %v1300_v17  ;;  %441 = vmatmul.f32.gmra.mxu0 %v410_v2  ;;  %v562_v17 = vld [vmem:[%s2341_s0 + $0x60] sm:$0xff] }
  0x80   :  { %470 = vmatmul.f32.gmra.mxu1 %v411_v3  ;;  %582 = vmatpush.msrb.mxu0 %v1307_v18  ;;  %v563_v18 = vld [vmem:[%s2341_s0 + $0x68] sm:$0xff] }
  0x81   :  { %611 = vmatpush.msrb.mxu1 %v1312_v19  ;;  %642 = vmatpush.msrb.mxu2 %v1343_v24  ;;  %v568_v19 = vld [vmem:[%s2341_s0 + $0xf0] sm:$0xff] }
  0x82   :  { %670 = vmatpush.msrb.mxu3 %v1324_v21  ;;  %583 = vmatpush.msrb.mxu0 %v1331_v22  ;;  %v566_v21 = vld [vmem:[%s2341_s0 + $0xe0] sm:$0xff]  ;;  %v567_v22 = vld [vmem:[%s2341_s0 + $0xe8] sm:$0xff] }
  0x83   :  { %612 = vmatpush.msrb.mxu1 %v1336_v23  ;;  %643 = vmatpush.msrb.mxu2 %v1367_v28  ;;  %v572_v28 = vld [vmem:[%s2341_s0 + $0x170] sm:$0xff] }
  0x84   :  { %671 = vmatpush.msrb.mxu3 %v1348_v25  ;;  %502 = vmatmul.f32.gmra.mxu2 %v416_v4 }
  0x85   :  { %584 = vmatpush.msrb.mxu0 %v1355_v26  ;;  %613 = vmatpush.msrb.mxu1 %v1360_v27 }
  0x86   :  { %644 = vmatpush.msrb.mxu2 %v1391_v32  ;;  %672 = vmatpush.msrb.mxu3 %v1372_v29  ;;  %v570_v32 = vld [vmem:[%s2341_s0 + $0x160] sm:$0xff] }
  0x87   :  { %531 = vmatmul.f32.gmra.mxu3 %v417_v5  ;;  %585 = vmatpush.msrb.mxu0 %v1379_v30  ;;  %v573_v30 = vld [vmem:[%s2341_s0 + $0x178] sm:$0xff] }
  0x88   :  { %614 = vmatpush.msrb.mxu1 %v1384_v31  ;;  %645 = vmatpush.msrb.mxu2 %v1415_v36 }
  0x89   :  { %673 = vmatpush.msrb.mxu3 %v1396_v33  ;;  %444 = vmatmul.f32.gmra.mxu0 %v414_v6  ;;  %v571_v33 = vld [vmem:[%s2341_s0 + $0x168] sm:$0xff] }
  0x8a   :  { %473 = vmatmul.f32.gmra.mxu1 %v415_v7  ;;  %586 = vmatpush.msrb.mxu0 %v1403_v34 }
  0x8b   :  { %615 = vmatpush.msrb.mxu1 %v1408_v35  ;;  %646 = vmatpush.msrb.mxu2 %v1439_v40 }
  0x8c   :  { %674 = vmatpush.msrb.mxu3 %v1420_v37  ;;  %587 = vmatpush.msrb.mxu0 %v1427_v38  ;;  %v576_v37 = vld [vmem:[%s2341_s0 + $0x1f0] sm:$0xff] }
  0x8d   :  { %616 = vmatpush.msrb.mxu1 %v1432_v39  ;;  %647 = vmatpush.msrb.mxu2 %v1463_v44  ;;  %v577_v39 = vld [vmem:[%s2341_s0 + $0x1f8] sm:$0xff] }
  0x8e   :  { %675 = vmatpush.msrb.mxu3 %v1444_v41  ;;  %505 = vmatmul.f32.gmra.mxu2 %v420_v8 }
  0x8f   :  { %588 = vmatpush.msrb.mxu0 %v1451_v42  ;;  %617 = vmatpush.msrb.mxu1 %v1456_v43  ;;  %v574_v42 = vld [vmem:[%s2341_s0 + $0x1e0] sm:$0xff]  ;;  %v575_v43 = vld [vmem:[%s2341_s0 + $0x1e8] sm:$0xff] }
  0x90   :  { %648 = vmatpush.msrb.mxu2 %v1487_v48  ;;  %676 = vmatpush.msrb.mxu3 %v1468_v45 }
  0x91   :  { %534 = vmatmul.f32.gmra.mxu3 %v421_v9  ;;  %589 = vmatpush.msrb.mxu0 %v2384_v11 }
  0x92   :  { %618 = vmatpush.msrb.mxu1 %v2385_v13  ;;  %649 = vmatpush.msrb.mxu2 %v1511_v52 }
  0x93   :  { %677 = vmatpush.msrb.mxu3 %v1492_v49  ;;  %447 = vmatmul.f32.gmra.mxu0 %v418_v10 }
  0x94   :  { %476 = vmatmul.f32.gmra.mxu1 %v419_v12  ;;  %590 = vmatpush.msrb.mxu0 %v1499_v50 }
  0x95   :  { %619 = vmatpush.msrb.mxu1 %v1504_v51  ;;  %650 = vmatpush.msrb.mxu2 %v1535_v56 }
  0x96   :  { %678 = vmatpush.msrb.mxu3 %v2380_v62  ;;  %591 = vmatpush.msrb.mxu0 %v2381_v53 }
  0x97   :  { %620 = vmatpush.msrb.mxu1 %v2382_v46  ;;  %651 = vmatpush.msrb.mxu2 %v1559_v60 }
  0x98   :  { %679 = vmatpush.msrb.mxu3 %v2386_v15  ;;  %592 = vmatpush.msrb.mxu0 %v1547_v58 }
  0x99   :  { %621 = vmatpush.msrb.mxu1 %v2378_v63  ;;  %652 = vmatmul.f32.vlgmr.msrb.gmra.mxu2 %v564_v14 }
  0x9a   :  { %680 = vmatpush.msrb.mxu3 %v2379_v54  ;;  %593 = vmatpush.msrb.mxu0 %v1581_v57 }
  0x9b   :  { %622 = vmatpush.msrb.mxu1 %v2383_v61  ;;  %681 = vmatmul.f32.vlgmr.msrb.gmra.mxu3 %v565_v16 }
  0x9c   :  { %594 = vmatmul.f32.vlgmr.msrb.gmra.mxu0 %v562_v17  ;;  %623 = vmatmul.f32.vlgmr.msrb.gmra.mxu1 %v563_v18 }
  0xa1   :  { %655 = vmatmul.f32.gmra.mxu2 %v568_v19 }
  0xa2   :  { %v127_v23 = vpop.f32.mrf.mxu0 }
  0xa3   :  { %684 = vmatmul.f32.gmra.mxu3 %v569_v20  ;;  %v156_v24 = vpop.f32.mrf.mxu1 }
  0xa4   :  { %597 = vmatmul.f32.gmra.mxu0 %v566_v21  ;;  %626 = vmatmul.f32.gmra.mxu1 %v567_v22  ;;  %v157_v25 = vadd.f32 %v156_v24, %v127_v23 }
  0xa5   :  { %v185_v26 = vpop.f32.mrf.mxu2  ;;  %v214_v27 = vpop.f32.mrf.mxu3 }
  0xa6   :  { %v186_v29 = vadd.f32 %v185_v26, %v157_v25 }
  0xa8   :  { %v1950_v31 = vadd.f32 %v214_v27, %v186_v29 }
  0xa9   :  { %658 = vmatmul.f32.gmra.mxu2 %v572_v28 }
  0xab   :  { %687 = vmatmul.f32.gmra.mxu3 %v573_v30 }
  0xac   :  { %600 = vmatmul.f32.gmra.mxu0 %v570_v32  ;;  %629 = vmatmul.f32.gmra.mxu1 %v571_v33  ;;  %v130_v34 = vpop.f32.mrf.mxu0  ;;  %v733_v32 = vld [vmem:[%s2343_s2 + $0x78] sm:$0xff] }
  0xad   :  { %v159_v35 = vpop.f32.mrf.mxu1  ;;  %v188_v36 = vpop.f32.mrf.mxu2  ;;  %734 = vmatpush.msra.mxu0 %v733_v32  ;;  %754 = vmatpush.msra.mxu1 %v733_v32 }
  0xae   :  { %v160_v38 = vadd.f32 %v159_v35, %v130_v34  ;;  %v732_v34 = vld [vmem:[%s2343_s2 + $0x70] sm:$0xff]  ;;  %v731_v35 = vld [vmem:[%s2343_s2 + $0x68] sm:$0xff] }
  0xaf   :  { %735 = vmatpush.msra.mxu0 %v732_v34  ;;  %755 = vmatpush.msra.mxu1 %v732_v34 }
  0xb0   :  { %v189_v40 = vadd.f32 %v188_v36, %v160_v38  ;;  %v217_v41 = vpop.f32.mrf.mxu3  ;;  %v730_v36 = vld [vmem:[%s2343_s2 + $0x60] sm:$0xff] }
  0xb1   :  { %661 = vmatmul.f32.gmra.mxu2 %v576_v37  ;;  %736 = vmatpush.msra.mxu0 %v731_v35 }
  0xb2   :  { %v1970_v44 = vadd.f32 %v217_v41, %v189_v40  ;;  %756 = vmatpush.msra.mxu1 %v731_v35  ;;  %v728_v41 = vld [vmem:[%s2343_s2 + $0x50] sm:$0xff]  ;;  %v718_v35 = vld [vmem:[%s2343_s2] sm:$0xff] }
  0xb3   :  { %690 = vmatmul.f32.gmra.mxu3 %v577_v39  ;;  %737 = vmatpush.msra.mxu0 %v730_v36  ;;  %v729_v39 = vld [vmem:[%s2343_s2 + $0x58] sm:$0xff] }
  0xb4   :  { %603 = vmatmul.f32.gmra.mxu0 %v574_v42  ;;  %632 = vmatmul.f32.gmra.mxu1 %v575_v43  ;;  %v727_v43 = vld [vmem:[%s2343_s2 + $0x48] sm:$0xff] }
  0xb5   :  { %757 = vmatpush.msra.mxu1 %v730_v36  ;;  %738 = vmatpush.msra.mxu0 %v729_v39 }
  0xb6   :  { %v133_v45 = vpop.f32.mrf.mxu0 }
  0xb7   :  { %v162_v46 = vpop.f32.mrf.mxu1  ;;  %v191_v48 = vpop.f32.mrf.mxu2  ;;  %758 = vmatpush.msra.mxu1 %v729_v39  ;;  %739 = vmatpush.msra.mxu0 %v728_v41 }
  0xb8   :  { %v163_v49 = vadd.f32 %v162_v46, %v133_v45  ;;  %v726_v46 = vld [vmem:[%s2343_s2 + $0x40] sm:$0xff] }
  0xb9   :  { %759 = vmatpush.msra.mxu1 %v728_v41  ;;  %740 = vmatpush.msra.mxu0 %v727_v43 }
  0xba   :  { %v192_v50 = vadd.f32 %v191_v48, %v163_v49  ;;  %v220_v51 = vpop.f32.mrf.mxu3 }
  0xbb   :  { %760 = vmatpush.msra.mxu1 %v727_v43  ;;  %741 = vmatpush.msra.mxu0 %v726_v46 }
  0xbc   :  { %v1972_v52 = vadd.f32 %v220_v51, %v192_v50 }
  0xbd   :  { %761 = vmatpush.msra.mxu1 %v726_v46 }
  0xc0   :  { %v136_v54 = vpop.f32.mrf.mxu0 }
  0xc1   :  { %v165_v56 = vpop.f32.mrf.mxu1  ;;  %v194_v57 = vpop.f32.mrf.mxu2 }
  0xc2   :  { %v166_v58 = vadd.f32 %v165_v56, %v136_v54  ;;  %v725_v56 = vld [vmem:[%s2343_s2 + $0x38] sm:$0xff] }
  0xc3   :  { %742 = vmatpush.msra.mxu0 %v725_v56  ;;  %762 = vmatpush.msra.mxu1 %v725_v56 }
  0xc4   :  { %v195_v60 = vadd.f32 %v194_v57, %v166_v58  ;;  %v223_v61 = vpop.f32.mrf.mxu3 }
  0xc6   :  { %v1974_v63 = vadd.f32 %v223_v61, %v195_v60  ;;  %v724_v60 = vld [vmem:[%s2343_s2 + $0x30] sm:$0xff] }
  0xc7   :  { %743 = vmatpush.msra.mxu0 %v724_v60  ;;  %763 = vmatpush.msra.mxu1 %v724_v60 }
  0xc8   :  { %v239_v32 = vmul.f32 %v1974_v63, %v1974_v63 }
  0xca   :  { %v283_v62 = vpop.f32.mrf.mxu0 }
  0xcb   :  { %v312_v53 = vpop.f32.mrf.mxu1 }
  0xcc   :  { %v313_v59 = vadd.f32 %v312_v53, %v283_v62  ;;  %v341_v55 = vpop.f32.mrf.mxu2 }
  0xce   :  { %v342_v47 = vadd.f32 %v341_v55, %v313_v59  ;;  %v723_v55 = vld [vmem:[%s2343_s2 + $0x28] sm:$0xff] }
  0xcf   :  { %v370_v0 = vpop.f32.mrf.mxu3  ;;  %744 = vmatpush.msra.mxu0 %v723_v55  ;;  %764 = vmatpush.msra.mxu1 %v723_v55  ;;  %v794_v55 = vld [vmem:[%s2344_s3] sm:$0xff] }
  0xd0   :  { %v1976_v1 = vadd.f32 %v370_v0, %v342_v47  ;;  %v237_v47 = vmul.f32 %v1970_v44, %v1970_v44  ;;  %814 = vmatpush.msra.mxu2 %v794_v55  ;;  %837 = vmatpush.msra.mxu3 %v794_v55 }
  0xd4   :  { %v286_v2 = vpop.f32.mrf.mxu0 }
  0xd5   :  { %v315_v3 = vpop.f32.mrf.mxu1  ;;  %v344_v4 = vpop.f32.mrf.mxu2 }
  0xd6   :  { %v316_v5 = vadd.f32 %v315_v3, %v286_v2 }
  0xd8   :  { %v345_v6 = vadd.f32 %v344_v4, %v316_v5  ;;  %v373_v7 = vpop.f32.mrf.mxu3  ;;  %v722_v5 = vld [vmem:[%s2343_s2 + $0x20] sm:$0xff] }
  0xd9   :  { %745 = vmatpush.msra.mxu0 %v722_v5  ;;  %765 = vmatpush.msra.mxu1 %v722_v5 }
  0xda   :  { %v1978_v8 = vadd.f32 %v373_v7, %v345_v6  ;;  %v236_v6 = vmul.f32 %v1950_v31, %v1950_v31 }
  0xdc   :  { %v393_v2 = vmul.f32 %v1978_v8, %v1978_v8 }
  0xde   :  { %v289_v9 = vpop.f32.mrf.mxu0 }
  0xdf   :  { %v318_v10 = vpop.f32.mrf.mxu1  ;;  %v347_v11 = vpop.f32.mrf.mxu2 }
  0xe0   :  { %v319_v12 = vadd.f32 %v318_v10, %v289_v9  ;;  %v226_v9 = vadd.f32 %v1970_v44, %v1950_v31  ;;  %v392_v10 = vmul.f32 %v1976_v1, %v1976_v1 }
  0xe2   :  { %v348_v13 = vadd.f32 %v347_v11, %v319_v12  ;;  %v376_v14 = vpop.f32.mrf.mxu3 }
  0xe4   :  { %v1980_v15 = vadd.f32 %v376_v14, %v348_v13 }
  0xe8   :  { %v292_v16 = vpop.f32.mrf.mxu0 }
  0xe9   :  { %v321_v17 = vpop.f32.mrf.mxu1  ;;  %v350_v18 = vpop.f32.mrf.mxu2 }
  0xea   :  { %v322_v48 = vadd.f32 %v321_v17, %v292_v16  ;;  %v721_v16 = vld [vmem:[%s2343_s2 + $0x18] sm:$0xff]  ;;  %v240_v17 = vadd.f32 %v237_v47, %v236_v6 }
  0xeb   :  { %746 = vmatpush.msra.mxu0 %v721_v16  ;;  %766 = vmatpush.msra.mxu1 %v721_v16 }
  0xec   :  { %v1982_v19 = vpop.f32.mrf.mxu3  ;;  %v351_v61 = vadd.f32 %v350_v18, %v322_v48  ;;  %v382_v18 = vadd.f32 %v1978_v8, %v1976_v1 }
  0xee   :  { %v2039_v7 = vadd.f32 %v1982_v19, %v351_v61  ;;  %v394_v19 = vmul.f32 %v1980_v15, %v1980_v15 }
  0xf2   :  { %v439_v20 = vpop.f32.mrf.mxu0 }
  0xf3   :  { %v468_v21 = vpop.f32.mrf.mxu1 }
  0xf4   :  { %v497_v22 = vpop.f32.mrf.mxu2  ;;  %v469_v49 = vadd.f32 %v468_v21, %v439_v20  ;;  %v238_v20 = vmul.f32 %v1972_v52, %v1972_v52  ;;  %v396_v21 = vadd.f32 %v393_v2, %v392_v10 }
  0xf6   :  { %v498_v53 = vadd.f32 %v497_v22, %v469_v49  ;;  %v397_v36 = vadd.f32 %v396_v21, %v394_v19 }
  0xf7   :  { %v1984_v23 = vpop.f32.mrf.mxu3 }
  0xf8   :  { %v2046_v11 = vadd.f32 %v1984_v23, %v498_v53 }
  0xfc   :  { %v442_v24 = vpop.f32.mrf.mxu0 }
  0xfd   :  { %v471_v25 = vpop.f32.mrf.mxu1  ;;  %v500_v26 = vpop.f32.mrf.mxu2 }
  0xfe   :  { %v472_v45 = vadd.f32 %v471_v25, %v442_v24  ;;  %v720_v24 = vld [vmem:[%s2343_s2 + $0x10] sm:$0xff]  ;;  %v719_v25 = vld [vmem:[%s2343_s2 + $0x8] sm:$0xff] }
  0xff   :  { %747 = vmatpush.msra.mxu0 %v720_v24  ;;  %767 = vmatpush.msra.mxu1 %v720_v24 }
 0x100   :  { %v529_v27 = vpop.f32.mrf.mxu3  ;;  %v501_v57 = vadd.f32 %v500_v26, %v472_v45  ;;  %v383_v26 = vadd.f32 %v382_v18, %v1980_v15 }
 0x101   :  { %748 = vmatpush.msra.mxu0 %v719_v25  ;;  %768 = vmatpush.msra.mxu1 %v719_v25 }
 0x102   :  { %v2031_v3 = vadd.f32 %v529_v27, %v501_v57  ;;  %v395_v27 = vmul.f32 %v2039_v7, %v2039_v7 }
 0x103   :  { %749 = vmatpush.msra.mxu0 %v718_v35  ;;  %769 = vmatpush.msra.mxu1 %v718_v35 }
 0x104   :  { %v549_v22 = vmul.f32 %v2031_v3, %v2031_v3  ;;  %v398_v46 = vadd.f32 %v397_v36, %v395_v27 }
 0x106   :  { %v445_v28 = vpop.f32.mrf.mxu0  ;;  %v399_v2 = vrot.slane %v398_v46, 4 }
 0x107   :  { %v474_v29 = vpop.f32.mrf.mxu1  ;;  %v503_v30 = vpop.f32.mrf.mxu2 }
 0x108   :  { %v475_v50 = vadd.f32 %v474_v29, %v445_v28  ;;  %v538_v28 = vadd.f32 %v2031_v3, %v2046_v11 }
 0x10a   :  { %v532_v33 = vpop.f32.mrf.mxu3  ;;  %v504_v59 = vadd.f32 %v503_v30, %v475_v50  ;;  %v227_v30 = vadd.f32 %v226_v9, %v1972_v52 }
 0x10c   :  { %v2048_v12 = vadd.f32 %v532_v33, %v504_v59  ;;  %v548_v33 = vmul.f32 %v2046_v11, %v2046_v11  ;;  %v228_v45 = vadd.f32 %v227_v30, %v1974_v63 }
 0x10e   :  { %v550_v34 = vmul.f32 %v2048_v12, %v2048_v12  ;;  %v552_v41 = vadd.f32 %v549_v22, %v548_v33  ;;  %v229_v47 = vrot.slane %v228_v45, 4 }
 0x110   :  { %v448_v37 = vpop.f32.mrf.mxu0  ;;  %v553_v49 = vadd.f32 %v552_v41, %v550_v34  ;;  %v230_v16 = vadd.f32 %v229_v47, %v228_v45 }
 0x111   :  { %v477_v38 = vpop.f32.mrf.mxu1  ;;  %v506_v40 = vpop.f32.mrf.mxu2 }
 0x112   :  { %v478_v58 = vadd.f32 %v477_v38, %v448_v37  ;;  %v384_v37 = vadd.f32 %v383_v26, %v2039_v7  ;;  %v539_v38 = vadd.f32 %v538_v28, %v2048_v12  ;;  %v231_v28 = vrot.slane %v230_v16, 2 }
 0x114   :  { %v535_v42 = vpop.f32.mrf.mxu3  ;;  %v507_v4 = vadd.f32 %v506_v40, %v478_v58  ;;  %v241_v40 = vadd.f32 %v240_v17, %v238_v20  ;;  %v385_v60 = vrot.slane %v384_v37, 4  ;;  %v400_v17 = vadd.f32 %v399_v2, %v398_v46 }
 0x116   :  { %v2061_v23 = vadd.f32 %v535_v42, %v507_v4  ;;  %v242_v58 = vadd.f32 %v241_v40, %v239_v32  ;;  %v386_v9 = vadd.f32 %v385_v60, %v384_v37 }
 0x118   :  { %v551_v42 = vmul.f32 %v2061_v23, %v2061_v23  ;;  %v540_v48 = vadd.f32 %v539_v38, %v2061_v23  ;;  %v387_v25 = vrot.slane %v386_v9, 2 }
 0x119   :  { %v2010_v51 = vpop.f32.mrf.mxu0  ;;  %v2012_v54 = vpop.f32.mrf.mxu1 }
 0x11a   :  { %v625_v50 = vadd.f32 %v2012_v54, %v2010_v51  ;;  %v554_v53 = vadd.f32 %v553_v49, %v551_v42  ;;  %v541_v4 = vrot.slane %v540_v48, 4  ;;  %v243_v54 = vrot.slane %v242_v58, 4 }
 0x11b   :  { %v388_v37 = vadd.f32 %v387_v25, %v386_v9 }
 0x11c   :  { %v2020_v62 = vpop.f32.mrf.mxu2  ;;  %v542_v18 = vadd.f32 %v541_v4, %v540_v48  ;;  %v244_v24 = vadd.f32 %v243_v54, %v242_v58 }
 0x11d   :  { %v654_v6 = vadd.f32 %v2020_v62, %v625_v50 }
 0x11e   :  { %v2027_v0 = vpop.f32.mrf.mxu3  ;;  %v543_v30 = vrot.slane %v542_v18, 2  ;;  %v245_v36 = vrot.slane %v244_v24, 2 }
 0x11f   :  { %v2099_v19 = vadd.f32 %v2027_v0, %v654_v6 }
 0x120   :  { %v544_v46 = vadd.f32 %v543_v30, %v542_v18 }
 0x121   :  { %v598_v13 = vpop.f32.mrf.mxu0  ;;  %v627_v14 = vpop.f32.mrf.mxu1  ;;  %v704_v33 = vmul.f32 %v2099_v19, %v2099_v19 }
 0x122   :  { %v628_v43 = vadd.f32 %v627_v14, %v598_v13  ;;  %v555_v13 = vrot.slane %v554_v53, 4  ;;  %v545_v55 = vrot.slane %v544_v46, 1 }
 0x124   :  { %v656_v29 = vpop.f32.mrf.mxu2  ;;  %v556_v26 = vadd.f32 %v555_v13, %v554_v53  ;;  %v546_v13 = vadd.f32 %v545_v55, %v544_v46  ;;  %v1012_v46 = vld [vmem:[%s2347_s6 + $0x170] sm:$0xff] }
 0x125   :  { %v657_v59 = vadd.f32 %v656_v29, %v628_v43  ;;  %v401_v29 = vrot.slane %v400_v17, 2  ;;  %v232_v43 = vadd.f32 %v231_v28, %v230_v16 }
 0x126   :  { %v685_v39 = vpop.f32.mrf.mxu3 }
 0x127   :  { %v2096_v14 = vadd.f32 %v685_v39, %v657_v59  ;;  %v557_v39 = vrot.slane %v556_v26, 2  ;;  %v402_v45 = vadd.f32 %v401_v29, %v400_v17  ;;  %v233_v53 = vrot.slane %v232_v43, 1 }
 0x129   :  { %v601_v56 = vpop.f32.mrf.mxu0  ;;  %v630_v57 = vpop.f32.mrf.mxu1  ;;  %v705_v27 = vmul.f32 %v2096_v14, %v2096_v14  ;;  %v694_v0 = vadd.f32 %v2096_v14, %v2099_v19  ;;  %v558_v58 = vadd.f32 %v557_v39, %v556_v26  ;;  %v403_v59 = vrot.slane %v402_v45, 1  ;;  %v1077_v39 = vld [vmem:[%s2347_s6 + $0x1f8] sm:$0xff] }
 0x12a   :  { %v631_v61 = vadd.f32 %v630_v57, %v601_v56  ;;  %v246_v56 = vadd.f32 %v245_v36, %v244_v24  ;;  %v389_v57 = vrot.slane %v388_v37, 1  ;;  %v234_v9 = vadd.f32 %v233_v53, %v232_v43  ;;  %v887_v36 = vld [vmem:[%s2347_s6 + $0x78] sm:$0xff]  ;;  %1078 = vmatpush.msrb.mxu3 %v1077_v39 }
 0x12b   :  { %v708_v40 = vadd.f32 %v705_v27, %v704_v33  ;;  %v559_v6 = vrot.slane %v558_v58, 1  ;;  %951 = vmatpush.msrb.mxu1 %v887_v36  ;;  %v922_v36 = vld [vmem:[%s2347_s6 + $0xb8] sm:$0xff] }
 0x12c   :  { %v659_v5 = vpop.f32.mrf.mxu2  ;;  %v247_v4 = vrot.slane %v246_v56, 1  ;;  %v1069_v39 = vld [vmem:[%s2347_s6 + $0x1b8] sm:$0xff] }
 0x12d   :  { %v660_v51 = vadd.f32 %v659_v5, %v631_v61  ;;  %v390_v5 = vadd.f32 %v389_v57, %v388_v37  ;;  %v560_v25 = vadd.f32 %v559_v6, %v558_v58  ;;  %v1013_v37 = vld [vmem:[%s2347_s6 + $0x178] sm:$0xff]  ;;  %v1075_v57 = vld [vmem:[%s2347_s6 + $0x1e8] sm:$0xff] }
 0x12e   :  { %v688_v10 = vpop.f32.mrf.mxu3  ;;  %v248_v18 = vadd.f32 %v247_v4, %v246_v56  ;;  %1014 = vmatpush.msrb.mxu2 %v1013_v37  ;;  %v1011_v56 = vld [vmem:[%s2347_s6 + $0x168] sm:$0xff]  ;;  %v879_v37 = vld [vmem:[%s2347_s6 + $0x38] sm:$0xff] }
 0x12f   :  { %v2101_v20 = vadd.f32 %v688_v10, %v660_v51  ;;  %v404_v10 = vadd.f32 %v403_v59, %v402_v45  ;;  %v391_v24 = vadd.f32 %v390_v5, %v234_v9 }
 0x130   :  { %1015 = vmatpush.msrb.mxu2 %v1012_v46  ;;  %v920_v46 = vld [vmem:[%s2347_s6 + $0xa8] sm:$0xff] }
 0x131   :  { %v604_v21 = vpop.f32.mrf.mxu0  ;;  %v633_v22 = vpop.f32.mrf.mxu1  ;;  %v706_v34 = vmul.f32 %v2101_v20, %v2101_v20  ;;  %v695_v41 = vadd.f32 %v694_v0, %v2101_v20  ;;  %v405_v27 = vadd.f32 %v404_v10, %v248_v18  ;;  %v927_v10 = vld [vmem:[%s2347_s6 + $0xe0] sm:$0xff]  ;;  %v926_v18 = vld [vmem:[%s2347_s6 + $0xd8] sm:$0xff] }
 0x132   :  { %v634_v62 = vadd.f32 %v633_v22, %v604_v21  ;;  %1016 = vmatpush.msrb.mxu2 %v1011_v56  ;;  %v919_v56 = vld [vmem:[%s2347_s6 + $0xa0] sm:$0xff] }
 0x133   :  { %v709_v48 = vadd.f32 %v708_v40, %v706_v34  ;;  %v561_v30 = vadd.f32 %v560_v25, %v405_v27  ;;  %v929_v40 = vld [vmem:[%s2347_s6 + $0xf0] sm:$0xff] }
 0x134   :  { %v662_v32 = vpop.f32.mrf.mxu2  ;;  %v925_v25 = vld [vmem:[%s2347_s6 + $0xd0] sm:$0xff] }
 0x135   :  { %v663_v35 = vadd.f32 %v662_v32, %v634_v62  ;;  %v547_v62 = vadd.f32 %v546_v13, %v391_v24  ;;  %v884_v13 = vld [vmem:[%s2347_s6 + $0x60] sm:$0xff]  ;;  %v1073_v24 = vld [vmem:[%s2347_s6 + $0x1d8] sm:$0xff]  ;;  %v1072_v27 = vld [vmem:[%s2347_s6 + $0x1d0] sm:$0xff] }
 0x136   :  { %v691_v38 = vpop.f32.mrf.mxu3 }
 0x137   :  { %v2112_v42 = vadd.f32 %v691_v38, %v663_v35  ;;  %v930_v35 = vld [vmem:[%s2347_s6 + $0xf8] sm:$0xff] }
 0x138   :  { %931 = vmatpush.msrb.mxu0 %v930_v35  ;;  %v1070_v35 = vld [vmem:[%s2347_s6 + $0x1c0] sm:$0xff] }
 0x139   :  { %v696_v49 = vadd.f32 %v695_v41, %v2112_v42  ;;  %v707_v50 = vmul.f32 %v2112_v42, %v2112_v42  ;;  %v886_v41 = vld [vmem:[%s2347_s6 + $0x70] sm:$0xff] }
 0x13a   :  { %932 = vmatpush.msrb.mxu0 %v929_v40  ;;  %952 = vmatpush.msrb.mxu1 %v886_v41  ;;  %v921_v40 = vld [vmem:[%s2347_s6 + $0xb0] sm:$0xff] }
 0x13b   :  { %v697_v60 = vrot.slane %v696_v49, 4  ;;  %v710_v61 = vadd.f32 %v709_v48, %v707_v50  ;;  %v1076_v48 = vld [vmem:[%s2347_s6 + $0x1f0] sm:$0xff]  ;;  %v885_v50 = vld [vmem:[%s2347_s6 + $0x68] sm:$0xff] }
 0x13c   :  { %1079 = vmatpush.msrb.mxu3 %v1076_v48  ;;  %953 = vmatpush.msrb.mxu1 %v885_v50  ;;  %v878_v41 = vld [vmem:[%s2347_s6 + $0x30] sm:$0xff]  ;;  %v877_v48 = vld [vmem:[%s2347_s6 + $0x28] sm:$0xff] }
 0x13d   :  { %v698_v47 = vadd.f32 %v697_v60, %v696_v49  ;;  %v711_v2 = vrot.slane %v710_v61, 4  ;;  %v928_v49 = vld [vmem:[%s2347_s6 + $0xe8] sm:$0xff] }
 0x13e   :  { %933 = vmatpush.msrb.mxu0 %v928_v49  ;;  %1080 = vmatpush.msrb.mxu3 %v1075_v57  ;;  %v1003_v49 = vld [vmem:[%s2347_s6 + $0x128] sm:$0xff]  ;;  %v876_v57 = vld [vmem:[%s2347_s6 + $0x20] sm:$0xff] }
 0x13f   :  { %v699_v51 = vrot.slane %v698_v47, 2  ;;  %v712_v54 = vadd.f32 %v711_v2, %v710_v61  ;;  %v778_v2 = vld [vmem:[%s2345_s4] sm:$0x1]  ;;  %954 = vmatpush.msrb.mxu1 %v884_v13  ;;  %v1067_v50 = vld [vmem:[%s2347_s6 + $0x1a8] sm:$0xff] }
 0x140   :  { %934 = vmatpush.msrb.mxu0 %v927_v10  ;;  %v915_v10 = vld [vmem:[%s2347_s6 + $0x80] sm:$0xff] }
 0x141   :  { %v700_v16 = vadd.f32 %v699_v51, %v698_v47  ;;  %v713_v17 = vrot.slane %v712_v54, 2  ;;  %v791_v51 = vld [vmem:[%s2346_s5] sm:$0x1] }
 0x142   :  { %935 = vmatpush.msrb.mxu0 %v926_v18  ;;  %v872_v13 = vld [vmem:[%s2347_s6] sm:$0xff] }
 0x143   :  { %v701_v21 = vrot.slane %v700_v16, 1  ;;  %v714_v22 = vadd.f32 %v713_v17, %v712_v54  ;;  %v1074_v17 = vld [vmem:[%s2347_s6 + $0x1e0] sm:$0xff] }
 0x144   :  { %1081 = vmatpush.msrb.mxu3 %v1074_v17  ;;  %936 = vmatpush.msrb.mxu0 %v925_v25  ;;  %v1062_v17 = vld [vmem:[%s2347_s6 + $0x180] sm:$0xff] }
 0x145   :  { %v702_v26 = vadd.f32 %v701_v21, %v700_v16  ;;  %v715_v28 = vrot.slane %v714_v22, 1  ;;  %v1010_v16 = vld [vmem:[%s2347_s6 + $0x160] sm:$0xff]  ;;  %v883_v21 = vld [vmem:[%s2347_s6 + $0x58] sm:$0xff] }
 0x146   :  { %1017 = vmatpush.msrb.mxu2 %v1010_v16  ;;  %955 = vmatpush.msrb.mxu1 %v883_v21  ;;  %v998_v16 = vld [vmem:[%s2347_s6 + $0x100] sm:$0xff] }
 0x147   :  { %v703_v29 = vadd.f32 %v702_v26, %v547_v62  ;;  %v716_v32 = vadd.f32 %v715_v28, %v714_v22  ;;  %v1009_v22 = vld [vmem:[%s2347_s6 + $0x158] sm:$0xff]  ;;  %1082 = vmatpush.msrb.mxu3 %v1073_v24  ;;  %v882_v62 = vld [vmem:[%s2347_s6 + $0x50] sm:$0xff]  ;;  %v924_v28 = vld [vmem:[%s2347_s6 + $0xc8] sm:$0xff] }
 0x148   :  { %1018 = vmatpush.msrb.mxu2 %v1009_v22  ;;  %v1008_v26 = vld [vmem:[%s2347_s6 + $0x150] sm:$0xff]  ;;  %956 = vmatpush.msrb.mxu1 %v882_v62 }
 0x149   :  { %750 = vmatmul.f32.vlgmr.msra.gmra.mxu0 %v703_v29  ;;  %v717_v33 = vadd.f32 %v716_v32, %v561_v30  ;;  %v881_v29 = vld [vmem:[%s2347_s6 + $0x48] sm:$0xff]  ;;  %1083 = vmatpush.msrb.mxu3 %v1072_v27 }
 0x14a   :  { %1019 = vmatpush.msrb.mxu2 %v1008_v26  ;;  %v1007_v30 = vld [vmem:[%s2347_s6 + $0x148] sm:$0xff]  ;;  %937 = vmatpush.msrb.mxu0 %v924_v28 }
 0x14b   :  { %770 = vmatmul.f32.vlgmr.msra.gmra.mxu1 %v717_v33  ;;  %v1071_v32 = vld [vmem:[%s2347_s6 + $0x1c8] sm:$0xff]  ;;  %v923_v33 = vld [vmem:[%s2347_s6 + $0xc0] sm:$0xff] }
 0x14c   :  { %957 = vmatpush.msrb.mxu1 %v881_v29  ;;  %1020 = vmatpush.msrb.mxu2 %v1007_v30 }
 0x14d   :  { %1084 = vmatpush.msrb.mxu3 %v1071_v32  ;;  %938 = vmatpush.msrb.mxu0 %v923_v33 }
 0x14f   :  { %1085 = vmatpush.msrb.mxu3 %v1070_v35  ;;  %939 = vmatpush.msrb.mxu0 %v922_v36 }
 0x151   :  { %1086 = vmatpush.msrb.mxu3 %v1069_v39  ;;  %940 = vmatpush.msrb.mxu0 %v921_v40 }
 0x153   :  { %941 = vmatpush.msrb.mxu0 %v920_v46 }
 0x155   :  { %942 = vmatpush.msrb.mxu0 %v919_v56 }
 0x1c6   :  { %v751_v0 = vpop.f32.mrf.mxu0 }
 0x1c7   :  { %v774_v34 = vmul.f32 0.00048828125, %v751_v0  ;;  %v880_v0 = vld [vmem:[%s2347_s6 + $0x40] sm:$0xff] }
 0x1c8   :  { %v771_v38 = vpop.f32.mrf.mxu1  ;;  %958 = vmatpush.msrb.mxu1 %v880_v0 }
 0x1c9   :  { %v776_v43 = vmul.f32 %v774_v34, %v774_v34  ;;  %v775_v45 = vmul.f32 0.00048828125, %v771_v38  ;;  %v1005_v38 = vld [vmem:[%s2347_s6 + $0x138] sm:$0xff] }
 0x1ca   :  { %959 = vmatpush.msrb.mxu1 %v879_v37 }
 0x1cb   :  { %v777_v58 = vsub.f32 %v775_v45, %v776_v43  ;;  %v1004_v43 = vld [vmem:[%s2347_s6 + $0x130] sm:$0xff] }
 0x1cc   :  { %v1068_v45 = vld [vmem:[%s2347_s6 + $0x1b0] sm:$0xff]  ;;  %960 = vmatpush.msrb.mxu1 %v878_v41 }
 0x1cd   :  { %v779_v60 = vadd.f32 1e-05, %v777_v58  ;;  %1087 = vmatpush.msrb.mxu3 %v1068_v45  ;;  %v1002_v58 = vld [vmem:[%s2347_s6 + $0x120] sm:$0xff] }
 0x1ce   :  { %961 = vmatpush.msrb.mxu1 %v877_v48 }
 0x1cf   :  { %1126 = vrsqrt.f32 %v779_v60  ;;  %vm786_vm1 = vweird.f32 %v779_v60  ;;  %1088 = vmatpush.msrb.mxu3 %v1067_v50 }
 0x1d0   :  { %962 = vmatpush.msrb.mxu1 %v876_v57 }
 0x1d5   :  { %v1127_v61 = vpop.eup %1126 }
 0x1d6   :  { %v781_v53 = vmul.f32 %v1127_v61, %v779_v60  ;;  %vm787_vm0 = vweird.f32 %v1127_v61  ;;  %v1066_v60 = vld [vmem:[%s2347_s6 + $0x1a0] sm:$0xff] }
 0x1d7   :  { %vm788_vm2 = vmor %vm786_vm1, %vm787_vm0  ;;  %1089 = vmatpush.msrb.mxu3 %v1066_v60 }
 0x1d8   :  { %v782_v59 = vmul.f32 %v1127_v61, %v781_v53  ;;  %v875_v53 = vld [vmem:[%s2347_s6 + $0x18] sm:$0xff] }
 0x1d9   :  { %963 = vmatpush.msrb.mxu1 %v875_v53 }
 0x1da   :  { %v783_v55 = vmul.f32 0.5, %v782_v59  ;;  %v1001_v59 = vld [vmem:[%s2347_s6 + $0x118] sm:$0xff] }
 0x1dc   :  { %v784_v47 = vsub.f32 1.5, %v783_v55  ;;  %v1065_v55 = vld [vmem:[%s2347_s6 + $0x198] sm:$0xff] }
 0x1dd   :  { %1090 = vmatpush.msrb.mxu3 %v1065_v55 }
 0x1de   :  { %v785_v4 = vmul.f32 %v1127_v61, %v784_v47  ;;  %v917_v47 = vld [vmem:[%s2347_s6 + $0x90] sm:$0xff] }
 0x1e0   :  { %v789_v5 = vsel %vm788_vm2, %v1127_v61, %v785_v4  ;;  %v918_v61 = vld [vmem:[%s2347_s6 + $0x98] sm:$0xff]  ;;  %v1000_v4 = vld [vmem:[%s2347_s6 + $0x110] sm:$0xff] }
 0x1e1   :  { %v790_v6 = vmul.f32 %v789_v5, %v778_v2  ;;  %v874_v2 = vld [vmem:[%s2347_s6 + $0x10] sm:$0xff]  ;;  %943 = vmatpush.msrb.mxu0 %v918_v61 }
 0x1e2   :  { %v1064_v5 = vld [vmem:[%s2347_s6 + $0x190] sm:$0xff]  ;;  %964 = vmatpush.msrb.mxu1 %v874_v2 }
 0x1e3   :  { %v792_v54 = vmul.f32 %v790_v6, %v774_v34  ;;  %1122 = vmatmul.msk.f32.vlgmr.msra.gmra.mxu2 %vm795_vm3, %v790_v6  ;;  %v1006_v34 = vld [vmem:[%s2347_s6 + $0x140] sm:$0xff]  ;;  %v916_v6 = vld [vmem:[%s2347_s6 + $0x88] sm:$0xff]  ;;  %944 = vmatpush.msrb.mxu0 %v917_v47 }
 0x1e4   :  { %1021 = vmatpush.msrb.mxu2 %v1006_v34  ;;  %1091 = vmatpush.msrb.mxu3 %v1064_v5 }
 0x1e5   :  { %v793_v9 = vsub.f32 %v791_v51, %v792_v54  ;;  %v873_v51 = vld [vmem:[%s2347_s6 + $0x8] sm:$0xff]  ;;  %945 = vmatpush.msrb.mxu0 %v916_v6 }
 0x1e6   :  { %1022 = vmatpush.msrb.mxu2 %v1005_v38  ;;  %v999_v54 = vld [vmem:[%s2347_s6 + $0x108] sm:$0xff]  ;;  %965 = vmatpush.msrb.mxu1 %v873_v51 }
 0x1e7   :  { %1123 = vmatmul.msk.f32.vlgmr.msra.gmra.mxu3 %vm795_vm3, %v793_v9  ;;  %v1063_v9 = vld [vmem:[%s2347_s6 + $0x188] sm:$0xff]  ;;  %946 = vmatpush.msrb.mxu0 %v915_v10 }
 0x1e8   :  { %1023 = vmatpush.msrb.mxu2 %v1004_v43  ;;  %1092 = vmatpush.msrb.mxu3 %v1063_v9 }
 0x1e9   :  { %966 = vmatpush.msrb.mxu1 %v872_v13 }
 0x1ea   :  { %1024 = vmatpush.msrb.mxu2 %v1003_v49  ;;  %1093 = vmatpush.msrb.mxu3 %v1062_v17 }
 0x1ec   :  { %1025 = vmatpush.msrb.mxu2 %v1002_v58 }
 0x1ee   :  { %1026 = vmatpush.msrb.mxu2 %v1001_v59 }
 0x1f0   :  { %1027 = vmatpush.msrb.mxu2 %v1000_v4 }
 0x1f2   :  { %1028 = vmatpush.msrb.mxu2 %v999_v54 }
 0x1f4   :  { %1029 = vmatpush.msrb.mxu2 %v998_v16 }
 0x266   :  { %v816_v18 = vpop.f32.mrf.mxu2 }
 0x267   :  { %v842_v21 = vperm.slane %v816_v18, 0 }
 0x269   :  { %v888_v22 = vmul.f32 %v842_v21, %v1976_v1  ;;  %v889_v24 = vmul.f32 %v842_v21, %v1978_v8  ;;  %v890_v25 = vmul.f32 %v842_v21, %v1980_v15  ;;  %v891_v62 = vmul.f32 %v842_v21, %v2039_v7 }
 0x26a   :  { %v839_v26 = vpop.f32.mrf.mxu3  ;;  %v843_v27 = vmul.f32 %v842_v21, %v1950_v31  ;;  %v844_v28 = vmul.f32 %v842_v21, %v1970_v44  ;;  %v845_v29 = vmul.f32 %v842_v21, %v1972_v52  ;;  %v846_v30 = vmul.f32 %v842_v21, %v1974_v63 }
 0x26b   :  { %v847_v32 = vperm.slane %v839_v26, 0  ;;  %v971_v33 = vmul.f32 %v842_v21, %v2046_v11  ;;  %v972_v1 = vmul.f32 %v842_v21, %v2031_v3  ;;  %v973_v8 = vmul.f32 %v842_v21, %v2048_v12 }
 0x26c   :  { %v974_v15 = vmul.f32 %v842_v21, %v2061_v23  ;;  %v1035_v7 = vmul.f32 %v842_v21, %v2099_v19  ;;  %v1036_v0 = vmul.f32 %v842_v21, %v2096_v14  ;;  %v1037_v31 = vmul.f32 %v842_v21, %v2101_v20 }
 0x26d   :  { %v892_v44 = vadd.f32 %v888_v22, %v847_v32  ;;  %v893_v34 = vadd.f32 %v889_v24, %v847_v32  ;;  %v894_v52 = vadd.f32 %v890_v25, %v847_v32  ;;  %v895_v35 = vadd.f32 %v891_v62, %v847_v32 }
 0x26e   :  { %v848_v63 = vadd.f32 %v847_v32, %v843_v27  ;;  %v849_v36 = vadd.f32 %v847_v32, %v844_v28  ;;  %v850_v37 = vadd.f32 %v847_v32, %v845_v29  ;;  %v851_v11 = vadd.f32 %v847_v32, %v846_v30 }
 0x26f   :  { %v896_v38 = vmax.f32 %v892_v44, 0.0  ;;  %v897_v3 = vmax.f32 %v893_v34, 0.0  ;;  %v898_v39 = vmax.f32 %v894_v52, 0.0  ;;  %v899_v12 = vmax.f32 %v895_v35, 0.0 }
 0x270   :  { %v852_v40 = vmax.f32 %v848_v63, 0.0  ;;  %v853_v23 = vmax.f32 %v849_v36, 0.0  ;;  %v854_v41 = vmax.f32 %v850_v37, 0.0  ;;  %v855_v19 = vmax.f32 %v851_v11, 0.0 }
 0x271   :  { %v900_v43 = vmax.f32 %v896_v38, %v897_v3  ;;  %v907_v14 = vmax.f32 %v898_v39, %v899_v12  ;;  %v975_v45 = vadd.f32 %v971_v33, %v847_v32  ;;  %v976_v20 = vadd.f32 %v972_v1, %v847_v32 }
 0x272   :  { %v856_v46 = vmax.f32 %v852_v40, %v853_v23  ;;  %v863_v48 = vmax.f32 %v854_v41, %v855_v19  ;;  %v977_v49 = vadd.f32 %v973_v8, %v847_v32  ;;  %v978_v50 = vadd.f32 %v974_v15, %v847_v32 }
 0x273   :  { %v901_v56 = vrot.slane %v900_v43, 4  ;;  %v908_v57 = vrot.slane %v907_v14, 4  ;;  %v979_v58 = vmax.f32 %v975_v45, 0.0  ;;  %v980_v60 = vmax.f32 %v976_v20, 0.0 }
 0x274   :  { %v857_v61 = vrot.slane %v856_v46, 4  ;;  %v864_v53 = vrot.slane %v863_v48, 4  ;;  %v981_v59 = vmax.f32 %v977_v49, 0.0  ;;  %v982_v55 = vmax.f32 %v978_v50, 0.0 }
 0x275   :  { %v902_v47 = vmax.f32 %v900_v43, %v901_v56  ;;  %v909_v2 = vmax.f32 %v907_v14, %v908_v57  ;;  %v983_v4 = vmax.f32 %v979_v58, %v980_v60  ;;  %v1038_v5 = vmul.f32 %v842_v21, %v2112_v42 }
 0x276   :  { %v858_v6 = vmax.f32 %v856_v46, %v857_v61  ;;  %v865_v51 = vmax.f32 %v863_v48, %v864_v53  ;;  %v990_v54 = vmax.f32 %v981_v59, %v982_v55  ;;  %v1039_v9 = vadd.f32 %v1035_v7, %v847_v32 }
 0x277   :  { %v903_v10 = vrot.slane %v902_v47, 2  ;;  %v910_v13 = vrot.slane %v909_v2, 2  ;;  %v984_v16 = vrot.slane %v983_v4, 4  ;;  %v1040_v17 = vadd.f32 %v1036_v0, %v847_v32 }
 0x278   :  { %v859_v18 = vrot.slane %v858_v6, 2  ;;  %v866_v22 = vrot.slane %v865_v51, 2  ;;  %v991_v24 = vrot.slane %v990_v54, 4  ;;  %v1041_v25 = vadd.f32 %v1037_v31, %v847_v32 }
 0x279   :  { %v904_v62 = vmax.f32 %v902_v47, %v903_v10  ;;  %v911_v26 = vmax.f32 %v909_v2, %v910_v13  ;;  %v985_v27 = vmax.f32 %v983_v4, %v984_v16  ;;  %v1042_v28 = vadd.f32 %v1038_v5, %v847_v32  ;;  %v1125_v4 = vld [vmem:[%s2348_s7] ss:$0 sm:$0xff] }
 0x27a   :  { %v860_v29 = vmax.f32 %v858_v6, %v859_v18  ;;  %v867_v30 = vmax.f32 %v865_v51, %v866_v22  ;;  %v992_v33 = vmax.f32 %v990_v54, %v991_v24  ;;  %v1043_v42 = vmax.f32 %v1039_v9, 0.0 }
 0x27b   :  { %v905_v21 = vrot.slane %v904_v62, 1  ;;  %v912_v1 = vrot.slane %v911_v26, 1  ;;  %v986_v8 = vrot.slane %v985_v27, 2  ;;  %v1044_v15 = vmax.f32 %v1040_v17, 0.0 }
 0x27c   :  { %v861_v7 = vrot.slane %v860_v29, 1  ;;  %v868_v44 = vrot.slane %v867_v30, 1  ;;  %v993_v34 = vrot.slane %v992_v33, 2  ;;  %v1045_v0 = vmax.f32 %v1041_v25, 0.0 }
 0x27d   :  { %v906_v52 = vmax.f32 %v904_v62, %v905_v21  ;;  %v913_v35 = vmax.f32 %v911_v26, %v912_v1  ;;  %v987_v63 = vmax.f32 %v985_v27, %v986_v8  ;;  %v1046_v31 = vmax.f32 %v1042_v28, 0.0 }
 0x27e   :  { %v862_v36 = vmax.f32 %v860_v29, %v861_v7  ;;  %v869_v37 = vmax.f32 %v867_v30, %v868_v44  ;;  %v994_v11 = vmax.f32 %v992_v33, %v993_v34  ;;  %v1047_v32 = vmax.f32 %v1043_v42, %v1044_v15 }
 0x27f   :  { %v914_v38 = vsel %vm870_vm4, %v906_v52, %v913_v35  ;;  %v988_v3 = vrot.slane %v987_v63, 1  ;;  %v1054_v39 = vmax.f32 %v1045_v0, %v1046_v31 }
 0x280   :  { %947 = vmatmul.f32.vlgmr.msrb.gmra.mxu0 %v914_v38  ;;  %v871_v12 = vsel %vm870_vm4, %v862_v36, %v869_v37  ;;  %v995_v40 = vrot.slane %v994_v11, 1  ;;  %v1048_v23 = vrot.slane %v1047_v32, 4 }
 0x281   :  { %967 = vmatmul.f32.vlgmr.msrb.gmra.mxu1 %v871_v12  ;;  %v989_v41 = vmax.f32 %v987_v63, %v988_v3  ;;  %v1055_v19 = vrot.slane %v1054_v39, 4 }
 0x282   :  { %v996_v43 = vmax.f32 %v994_v11, %v995_v40  ;;  %v1049_v14 = vmax.f32 %v1047_v32, %v1048_v23 }
 0x283   :  { %v1056_v45 = vmax.f32 %v1054_v39, %v1055_v19 }
 0x284   :  { %v997_v20 = vsel %vm870_vm4, %v989_v41, %v996_v43  ;;  %v1050_v46 = vrot.slane %v1049_v14, 2 }
 0x285   :  { %1030 = vmatmul.f32.vlgmr.msrb.gmra.mxu2 %v997_v20  ;;  %v1057_v48 = vrot.slane %v1056_v45, 2 }
 0x286   :  { %v1051_v49 = vmax.f32 %v1049_v14, %v1050_v46 }
 0x287   :  { %v1058_v50 = vmax.f32 %v1056_v45, %v1057_v48 }
 0x288   :  { %v1052_v56 = vrot.slane %v1051_v49, 1 }
 0x289   :  { %v1059_v57 = vrot.slane %v1058_v50, 1 }
 0x28a   :  { %v1053_v58 = vmax.f32 %v1051_v49, %v1052_v56 }
 0x28b   :  { %v1060_v60 = vmax.f32 %v1058_v50, %v1059_v57 }
 0x28d   :  { %v1061_v61 = vsel %vm870_vm4, %v1053_v58, %v1060_v60 }
 0x28e   :  { %1094 = vmatmul.f32.vlgmr.msrb.gmra.mxu3 %v1061_v61 }
 0x2fd   :  { %v948_v53 = vpop.f32.mrf.mxu0 }
 0x2fe   :  { %v968_v59 = vpop.f32.mrf.mxu1 }
 0x2ff   :  { %v969_v47 = vadd.f32 %v968_v59, %v948_v53 }
 0x308   :  { %v1031_v55 = vpop.f32.mrf.mxu2 }
 0x309   :  { %v1034_v2 = vadd.f32 %v1031_v55, %v969_v47 }
 0x311   :  { %v1095_v5 = vpop.f32.mrf.mxu3 }
 0x312   :  { %v1098_v6 = vadd.f32 %v1095_v5, %v1034_v2 }
 0x314   :  { %v1103_v51 = vadd.f32 %v1125_v4, %v1098_v6 }
 0x316   :  { %1105 = vst.msk [vmem:[#allocation2] sm:$0x3] %vm1104_vm5, %v1103_v51 }
 0x317   :  { %1116 = dma.vmem_to_hbm [thread:$0]  %s1112_s18, 32, %s1114_s20, [#allocation3]  }
 0x318   :  { %1152 = dma.done.wait [#allocation3], 32  }
 0x319   :  { %1153 = vsyncadd [#allocation3], 4294967264 }
 0x31a   :  { %1121 = vsyncpa [#allocation3], 1 }

</bundles_post_ra>
